<compile_context>
chip_gen: v6e
topology: v6e:2x2x1
jax: 0.10.0
libtpu: 0.0.40
codegen_flags: <defaults>
</compile_context>

<pallas_src>
import functools

import jax
import jax.numpy as jnp
from jax import lax
from jax.experimental import pallas as pl
from jax.experimental.pallas import tpu as pltpu

KSIZE = 7            # folded/stacked kernel size (5x5 local fold zero-padded to 7x7)
HALO = KSIZE // 2    # = 3
ROWPAD = HALO + 1    # = 4: rows padded by 4 so every flat tap shift is >= 0


def _lgc_kernel(x_ref, w_ref, b_ref, out_ref, slab_ref, *, width):
    """One (batch, row-block) grid step.

    x_ref    : (1, 1, C, (TH + 2*ROWPAD) * W)  halo'd row block, row-major flat
    w_ref    : (2C, 49*C)                      lane-dense packed folded weights
    b_ref    : (2C, 1)                         stacked bias (f32)
    out_ref  : (1, 2C, TH*W)                   stacked local||global output block
    slab_ref : (49*C, TH*W)                    im2col staging scratch
    """
    W = width
    C = x_ref.shape[2]
    TB = out_ref.shape[2]                      # TH * W output positions

    # Column coordinate of every output lane (row-major positions, block starts
    # on a row boundary, so it only depends on the lane index).
    col = lax.broadcasted_iota(jnp.int32, (1, TB), 1) % W

    # ---- im2col staging: 49 lane-shifted windows -> (49*C, TB) slab ---------
    # The horizontal validity mask is folded into the staging writes (one mask
    # per dx); no post-matmul select/add passes.
    for dx in range(KSIZE):
        if dx == HALO:
            valid = None                                       # centre column: all valid
        else:
            valid = (col >= (HALO - dx)) & (col < (W + HALO - dx))
        for dy in range(KSIZE):
            t = dy * KSIZE + dx
            shift = (dy + 1) * W + dx - HALO                   # static, >= W - HALO >= 0
            win = x_ref[0, 0, :, shift:shift + TB]             # (C, TB) lane window
            if valid is not None:
                win = jnp.where(valid, win, jnp.zeros((), win.dtype))
            slab_ref[t * C:(t + 1) * C, :] = win

    # ---- single big-K MXU matmul: (2C, 49C) x (49C, TB), f32 accumulation ---
    acc = jnp.dot(w_ref[...], slab_ref[...], preferred_element_type=jnp.float32)
    out_ref[0] = (acc + b_ref[...]).astype(out_ref.dtype)


def _fold_weights(params):
    """Fold local branch (1x1/3x3/5x5 + 1x1 fusion) into one 7x7 conv, stacked
    with the global 7x7 conv, and pack lane-dense for the K-stacked matmul.

    Returns:
      w_packed: (2C, 49*C), K ordered (dy, dx, ic) to match the im2col slab.
      b_all   : (2C, 1)
    """
    w1, b1, w3, b3, w5, b5, w7, b7, wf, bf = params

    def fold(w, f):                                    # (k,k,C,C),(C,C)->(k,k,C,C)
        return jnp.einsum('yxio,oc->yxic', w, f)

    def pad_to(w, k):                                  # centre-pad spatially to k x k
        p = (k - w.shape[0]) // 2
        return jnp.pad(w, ((p, p), (p, p), (0, 0), (0, 0)))

    w_local = (pad_to(fold(w1, wf[0]), KSIZE)
               + pad_to(fold(w3, wf[1]), KSIZE)
               + pad_to(fold(w5, wf[2]), KSIZE))       # (7,7,C,C)
    b_local = b1 @ wf[0] + b3 @ wf[1] + b5 @ wf[2] + bf

    w_all = jnp.concatenate([w_local, pad_to(w7, KSIZE)], axis=-1)   # (7,7,C,2C)
    b_all = jnp.concatenate([b_local, b7], axis=0)                   # (2C,)

    C = w1.shape[-1]
    w_packed = jnp.transpose(w_all, (3, 0, 1, 2)).reshape(2 * C, KSIZE * KSIZE * C)
    return w_packed.astype(jnp.float32), b_all.astype(jnp.float32)[:, None]


def _pick_row_tile(H, W):
    """Output rows per block: TH | H, TH*W % 128 == 0 (unmasked lane-dense
    stores), <= ~2048 lanes, and >= 2 row blocks when possible."""
    cands = [d for d in range(1, H) if H % d == 0 and (d * W) % 128 == 0]
    if not cands:
        return H                                   # whole image (full-dim block)
    good = [d for d in cands if d * W <= 2048]
    return good[-1] if good else cands[0]


def local_global_conv(x_nchw, params, *, compute_dtype=jnp.bfloat16):
    """Pallas forward. x_nchw: (N, C, H, W) f32 -> (local, global) in NCHW f32."""
    N, C, H, W = x_nchw.shape
    assert W >= 3, "flat-shift window construction requires W >= 3"
    HW = H * W
    TH = _pick_row_tile(H, W)
    TB = TH * W
    n_rb = H // TH
    L_blk = (TH + 2 * ROWPAD) * W

    w_packed, b_all = _fold_weights(params)
    w_packed = w_packed.astype(compute_dtype)

    # Row-halo pad, cast MXU operand dtype ONCE, then materialize each row
    # block with its halo so every in-kernel tap window is a static slice.
    x_pad = jnp.pad(x_nchw.astype(compute_dtype),
                    ((0, 0), (0, 0), (ROWPAD, ROWPAD), (0, 0)))      # (N,C,H+8,W)
    blocks = [x_pad[:, :, rb * TH: rb * TH + TH + 2 * ROWPAD, :]
              for rb in range(n_rb)]
    x_blk = jnp.stack(blocks, axis=1).reshape(N, n_rb, C, L_blk)

    kernel = functools.partial(_lgc_kernel, width=W)

    isz = jnp.dtype(compute_dtype).itemsize
    flops = 2 * N * (2 * C) * (KSIZE * KSIZE * C) * HW
    bytes_accessed = int(N * n_rb * C * L_blk * isz + int(w_packed.size) * isz
                         + int(b_all.size) * 4 + N * 2 * C * HW * 4)

    # VMEM budget: double-buffered input/weight/bias/output blocks + im2col slab.
    vmem_need = (2 * C * L_blk * isz
                 + 2 * int(w_packed.size) * isz
                 + 2 * 2 * C * 128 * 4
                 + 2 * 2 * C * TB * 4
                 + KSIZE * KSIZE * C * TB * isz)
    vmem_limit = int(min(max(2 * vmem_need, 32 * 2**20), 96 * 2**20))

    out = pl.pallas_call(
        kernel,
        out_shape=jax.ShapeDtypeStruct((N, 2 * C, HW), jnp.float32),
        grid_spec=pltpu.PrefetchScalarGridSpec(
            num_scalar_prefetch=0,
            grid=(N, n_rb),
            in_specs=[
                pl.BlockSpec((1, 1, C, L_blk), lambda n, rb: (n, rb, 0, 0)),
                pl.BlockSpec(w_packed.shape, lambda n, rb: (0, 0)),
                pl.BlockSpec(b_all.shape, lambda n, rb: (0, 0)),
            ],
            out_specs=pl.BlockSpec((1, 2 * C, TB), lambda n, rb: (n, 0, rb)),
            scratch_shapes=[pltpu.VMEM((KSIZE * KSIZE * C, TB), compute_dtype)],
        ),
        compiler_params=pltpu.CompilerParams(
            dimension_semantics=("parallel", "parallel"),
            vmem_limit_bytes=vmem_limit),
        cost_estimate=pl.CostEstimate(flops=flops, transcendentals=0,
                                      bytes_accessed=bytes_accessed),
    )(x_blk, w_packed, b_all)

    out = out.reshape(N, 2 * C, H, W)
    return out[:, :C], out[:, C:]                     # (local_fused, global_fused)


# ---------------- pure-JAX reference (unfused path, for correctness) ----------
def _ref_conv(x, w, b, pad):
    y = lax.conv_general_dilated(
        x, w, window_strides=(1, 1), padding=((pad, pad), (pad, pad)),
        dimension_numbers=("NHWC", "HWIO", "NHWC"))
    return y + b


def reference(x_nchw, params):
    w1, b1, w3, b3, w5, b5, w7, b7, wf, bf = params
    x = jnp.transpose(x_nchw, (0, 2, 3, 1))
    C = x.shape[-1]
    y1 = _ref_conv(x, w1, b1, 0)
    y3 = _ref_conv(x, w3, b3, 1)
    y5 = _ref_conv(x, w5, b5, 2)
    y7 = _ref_conv(x, w7, b7, 3)
    cat = jnp.concatenate([y1, y3, y5], axis=-1)                  # (N,H,W,3C)
    fused = jnp.einsum('nhwk,kc->nhwc', cat, wf.reshape(3 * C, C)) + bf
    return (jnp.transpose(fused, (0, 3, 1, 2)),
            jnp.transpose(y7, (0, 3, 1, 2)))


if __name__ == "__main__":
    N, C, H, W = 2, 4, 16, 16
    keys = jax.random.split(jax.random.PRNGKey(0), 11)

    def wgen(k, shape):
        return 0.1 * jax.random.normal(k, shape, jnp.float32)

    x = jax.random.normal(keys[0], (N, C, H, W), jnp.float32)
    params = (
        wgen(keys[1], (1, 1, C, C)), wgen(keys[2], (C,)),   # conv1x1
        wgen(keys[3], (3, 3, C, C)), wgen(keys[4], (C,)),   # conv3x3
        wgen(keys[5], (5, 5, C, C)), wgen(keys[6], (C,)),   # conv5x5
        wgen(keys[7], (7, 7, C, C)), wgen(keys[8], (C,)),   # conv7x7 (global)
        wgen(keys[9], (3, C, C)),    wgen(keys[10], (C,)),  # local_fusion 1x1
    )

    ref_l, ref_g = reference(x, params)

    # f32 MXU-operand path: tight tolerance vs the unfused reference.
    out_l32, out_g32 = local_global_conv(x, params, compute_dtype=jnp.float32)
    jax.block_until_ready((out_l32, out_g32))
    assert out_l32.shape == (N, C, H, W) and out_g32.shape == (N, C, H, W)
    assert jnp.allclose(out_l32, ref_l, atol=1e-4, rtol=1e-4)
    assert jnp.allclose(out_g32, ref_g, atol=1e-4, rtol=1e-4)

    # Default bf16 MXU-operand path (f32 accumulation): looser tolerance.
    out_l, out_g = local_global_conv(x, params)
    jax.block_until_ready((out_l, out_g))
    assert out_l.shape == (N, C, H, W) and out_g.shape == (N, C, H, W)
    assert jnp.allclose(out_l, ref_l, atol=5e-2, rtol=5e-2)
    assert jnp.allclose(out_g, ref_g, atol=5e-2, rtol=5e-2)

    print("KERNEL_OK")
</pallas_src>

<mosaic_0001>
module attributes {stable_mosaic.version = 11 : i64} {
  func.func @_lgc_kernel(%arg0: i32, %arg1: i32, %arg2: memref<1x1x4x256xf32, #tpu.memory_space<vmem>>, %arg3: memref<8x196xf32, #tpu.memory_space<vmem>>, %arg4: memref<8x1xf32, #tpu.memory_space<vmem>>, %arg5: memref<1x8x128xf32, #tpu.memory_space<vmem>>, %arg6: memref<196x128xf32, #tpu.memory_space<vmem>>) attributes {dimension_semantics = [#tpu.dimension_semantics<parallel>, #tpu.dimension_semantics<parallel>], iteration_bounds = array<i64: 2, 2>, scalar_prefetch = 0 : i64, scratch_operands = 1 : i64, tpu.core_type = #tpu.core_type<tc>, window_params = [{transform_indices = @transform_0, window_bounds = array<i64: 1, 1, 4, 256>}, {pipeline_mode = #tpu.pipeline_mode<synchronous>, transform_indices = @transform_1, window_bounds = array<i64: 8, 196>}, {pipeline_mode = #tpu.pipeline_mode<synchronous>, transform_indices = @transform_2, window_bounds = array<i64: 8, 1>}, {transform_indices = @transform_3, window_bounds = array<i64: 1, 8, 128>}]} {
    %0 = tpu.iota {dimensions = array<i32: 1>} : vector<1x128xi32>
    %c16_i32 = arith.constant 16 : i32
    %c0_i32 = arith.constant 0 : i32
    %1 = arith.cmpi eq, %c16_i32, %c0_i32 : i32
    %c1_i32 = arith.constant 1 : i32
    %2 = arith.select %1, %c1_i32, %c16_i32 : i32
    %3 = vector.broadcast %2 : i32 to vector<1x128xi32>
    %4 = arith.remsi %0, %3 : vector<1x128xi32>
    %c0_i32_0 = arith.constant 0 : i32
    %5 = vector.broadcast %c0_i32_0 : i32 to vector<1x128xi32>
    %6 = arith.cmpi ne, %4, %5 : vector<1x128xi32>
    %c0_i32_1 = arith.constant 0 : i32
    %7 = vector.broadcast %c0_i32_1 : i32 to vector<1x128xi32>
    %8 = arith.cmpi slt, %4, %7 : vector<1x128xi32>
    %c0_i32_2 = arith.constant 0 : i32
    %9 = arith.cmpi slt, %2, %c0_i32_2 : i32
    %10 = vector.broadcast %9 : i1 to vector<1x128xi1>
    %11 = vector.broadcast %10 : vector<1x128xi1> to vector<1x128xi1>
    %12 = arith.xori %8, %11 : vector<1x128xi1>
    %13 = arith.andi %12, %6 : vector<1x128xi1>
    %14 = vector.broadcast %2 : i32 to vector<1x128xi32>
    %15 = arith.addi %4, %14 : vector<1x128xi32>
    %16 = arith.select %13, %15, %4 : vector<1x128xi1>, vector<1x128xi32>
    %c3_i32 = arith.constant 3 : i32
    %17 = vector.broadcast %c3_i32 : i32 to vector<1x128xi32>
    %18 = arith.cmpi sge, %16, %17 : vector<1x128xi32>
    %c19_i32 = arith.constant 19 : i32
    %19 = vector.broadcast %c19_i32 : i32 to vector<1x128xi32>
    %20 = arith.cmpi slt, %16, %19 : vector<1x128xi32>
    %21 = arith.andi %18, %20 : vector<1x128xi1>
    %c0 = arith.constant 0 : index
    %c0_3 = arith.constant 0 : index
    %c0_4 = arith.constant 0 : index
    %c13 = arith.constant 13 : index
    %22 = vector.load %arg2[%c0, %c0_3, %c0_4, %c13] : memref<1x1x4x256xf32, #tpu.memory_space<vmem>>, vector<1x1x4x128xf32>
    %23 = vector.shape_cast %22 : vector<1x1x4x128xf32> to vector<4x128xf32>
    %cst = arith.constant 0.000000e+00 : f32
    %24 = vector.shape_cast %21 : vector<1x128xi1> to vector<1x128xi1>
    %25 = vector.broadcast %24 : vector<1x128xi1> to vector<4x128xi1>
    %26 = vector.broadcast %cst : f32 to vector<4x128xf32>
    %27 = arith.select %25, %23, %26 : vector<4x128xi1>, vector<4x128xf32>
    %c0_5 = arith.constant 0 : index
    %c0_6 = arith.constant 0 : index
    %28 = vector.load %arg6[%c0_5, %c0_6] : memref<196x128xf32, #tpu.memory_space<vmem>>, vector<4x128xf32>
    tpu.vector_store %arg6[%c0_5, %c0_6], %27 {strides = array<i32>} : memref<196x128xf32, #tpu.memory_space<vmem>>, vector<4x128xf32>,
    %c0_7 = arith.constant 0 : index
    %c0_8 = arith.constant 0 : index
    %c0_9 = arith.constant 0 : index
    %c29 = arith.constant 29 : index
    %29 = vector.load %arg2[%c0_7, %c0_8, %c0_9, %c29] : memref<1x1x4x256xf32, #tpu.memory_space<vmem>>, vector<1x1x4x128xf32>
    %30 = vector.shape_cast %29 : vector<1x1x4x128xf32> to vector<4x128xf32>
    %cst_10 = arith.constant 0.000000e+00 : f32
    %31 = vector.shape_cast %21 : vector<1x128xi1> to vector<1x128xi1>
    %32 = vector.broadcast %31 : vector<1x128xi1> to vector<4x128xi1>
    %33 = vector.broadcast %cst_10 : f32 to vector<4x128xf32>
    %34 = arith.select %32, %30, %33 : vector<4x128xi1>, vector<4x128xf32>
    %c28 = arith.constant 28 : index
    %c0_11 = arith.constant 0 : index
    %35 = vector.load %arg6[%c28, %c0_11] : memref<196x128xf32, #tpu.memory_space<vmem>>, vector<4x128xf32>
    tpu.vector_store %arg6[%c28, %c0_11], %34 {strides = array<i32>} : memref<196x128xf32, #tpu.memory_space<vmem>>, vector<4x128xf32>,
    %c0_12 = arith.constant 0 : index
    %c0_13 = arith.constant 0 : index
    %c0_14 = arith.constant 0 : index
    %c45 = arith.constant 45 : index
    %36 = vector.load %arg2[%c0_12, %c0_13, %c0_14, %c45] : memref<1x1x4x256xf32, #tpu.memory_space<vmem>>, vector<1x1x4x128xf32>
    %37 = vector.shape_cast %36 : vector<1x1x4x128xf32> to vector<4x128xf32>
    %cst_15 = arith.constant 0.000000e+00 : f32
    %38 = vector.shape_cast %21 : vector<1x128xi1> to vector<1x128xi1>
    %39 = vector.broadcast %38 : vector<1x128xi1> to vector<4x128xi1>
    %40 = vector.broadcast %cst_15 : f32 to vector<4x128xf32>
    %41 = arith.select %39, %37, %40 : vector<4x128xi1>, vector<4x128xf32>
    %c56 = arith.constant 56 : index
    %c0_16 = arith.constant 0 : index
    %42 = vector.load %arg6[%c56, %c0_16] : memref<196x128xf32, #tpu.memory_space<vmem>>, vector<4x128xf32>
    tpu.vector_store %arg6[%c56, %c0_16], %41 {strides = array<i32>} : memref<196x128xf32, #tpu.memory_space<vmem>>, vector<4x128xf32>,
    %c0_17 = arith.constant 0 : index
    %c0_18 = arith.constant 0 : index
    %c0_19 = arith.constant 0 : index
    %c61 = arith.constant 61 : index
    %43 = vector.load %arg2[%c0_17, %c0_18, %c0_19, %c61] : memref<1x1x4x256xf32, #tpu.memory_space<vmem>>, vector<1x1x4x128xf32>
    %44 = vector.shape_cast %43 : vector<1x1x4x128xf32> to vector<4x128xf32>
    %cst_20 = arith.constant 0.000000e+00 : f32
    %45 = vector.shape_cast %21 : vector<1x128xi1> to vector<1x128xi1>
    %46 = vector.broadcast %45 : vector<1x128xi1> to vector<4x128xi1>
    %47 = vector.broadcast %cst_20 : f32 to vector<4x128xf32>
    %48 = arith.select %46, %44, %47 : vector<4x128xi1>, vector<4x128xf32>
    %c84 = arith.constant 84 : index
    %c0_21 = arith.constant 0 : index
    %49 = vector.load %arg6[%c84, %c0_21] : memref<196x128xf32, #tpu.memory_space<vmem>>, vector<4x128xf32>
    tpu.vector_store %arg6[%c84, %c0_21], %48 {strides = array<i32>} : memref<196x128xf32, #tpu.memory_space<vmem>>, vector<4x128xf32>,
    %c0_22 = arith.constant 0 : index
    %c0_23 = arith.constant 0 : index
    %c0_24 = arith.constant 0 : index
    %c77 = arith.constant 77 : index
    %50 = vector.load %arg2[%c0_22, %c0_23, %c0_24, %c77] : memref<1x1x4x256xf32, #tpu.memory_space<vmem>>, vector<1x1x4x128xf32>
    %51 = vector.shape_cast %50 : vector<1x1x4x128xf32> to vector<4x128xf32>
    %cst_25 = arith.constant 0.000000e+00 : f32
    %52 = vector.shape_cast %21 : vector<1x128xi1> to vector<1x128xi1>
    %53 = vector.broadcast %52 : vector<1x128xi1> to vector<4x128xi1>
    %54 = vector.broadcast %cst_25 : f32 to vector<4x128xf32>
    %55 = arith.select %53, %51, %54 : vector<4x128xi1>, vector<4x128xf32>
    %c112 = arith.constant 112 : index
    %c0_26 = arith.constant 0 : index
    %56 = vector.load %arg6[%c112, %c0_26] : memref<196x128xf32, #tpu.memory_space<vmem>>, vector<4x128xf32>
    tpu.vector_store %arg6[%c112, %c0_26], %55 {strides = array<i32>} : memref<196x128xf32, #tpu.memory_space<vmem>>, vector<4x128xf32>,
    %c0_27 = arith.constant 0 : index
    %c0_28 = arith.constant 0 : index
    %c0_29 = arith.constant 0 : index
    %c93 = arith.constant 93 : index
    %57 = vector.load %arg2[%c0_27, %c0_28, %c0_29, %c93] : memref<1x1x4x256xf32, #tpu.memory_space<vmem>>, vector<1x1x4x128xf32>
    %58 = vector.shape_cast %57 : vector<1x1x4x128xf32> to vector<4x128xf32>
    %cst_30 = arith.constant 0.000000e+00 : f32
    %59 = vector.shape_cast %21 : vector<1x128xi1> to vector<1x128xi1>
    %60 = vector.broadcast %59 : vector<1x128xi1> to vector<4x128xi1>
    %61 = vector.broadcast %cst_30 : f32 to vector<4x128xf32>
    %62 = arith.select %60, %58, %61 : vector<4x128xi1>, vector<4x128xf32>
    %c140 = arith.constant 140 : index
    %c0_31 = arith.constant 0 : index
    %63 = vector.load %arg6[%c140, %c0_31] : memref<196x128xf32, #tpu.memory_space<vmem>>, vector<4x128xf32>
    tpu.vector_store %arg6[%c140, %c0_31], %62 {strides = array<i32>} : memref<196x128xf32, #tpu.memory_space<vmem>>, vector<4x128xf32>,
    %c0_32 = arith.constant 0 : index
    %c0_33 = arith.constant 0 : index
    %c0_34 = arith.constant 0 : index
    %c109 = arith.constant 109 : index
    %64 = vector.load %arg2[%c0_32, %c0_33, %c0_34, %c109] : memref<1x1x4x256xf32, #tpu.memory_space<vmem>>, vector<1x1x4x128xf32>
    %65 = vector.shape_cast %64 : vector<1x1x4x128xf32> to vector<4x128xf32>
    %cst_35 = arith.constant 0.000000e+00 : f32
    %66 = vector.shape_cast %21 : vector<1x128xi1> to vector<1x128xi1>
    %67 = vector.broadcast %66 : vector<1x128xi1> to vector<4x128xi1>
    %68 = vector.broadcast %cst_35 : f32 to vector<4x128xf32>
    %69 = arith.select %67, %65, %68 : vector<4x128xi1>, vector<4x128xf32>
    %c168 = arith.constant 168 : index
    %c0_36 = arith.constant 0 : index
    %70 = vector.load %arg6[%c168, %c0_36] : memref<196x128xf32, #tpu.memory_space<vmem>>, vector<4x128xf32>
    tpu.vector_store %arg6[%c168, %c0_36], %69 {strides = array<i32>} : memref<196x128xf32, #tpu.memory_space<vmem>>, vector<4x128xf32>,
    %c2_i32 = arith.constant 2 : i32
    %71 = vector.broadcast %c2_i32 : i32 to vector<1x128xi32>
    %72 = arith.cmpi sge, %16, %71 : vector<1x128xi32>
    %c18_i32 = arith.constant 18 : i32
    %73 = vector.broadcast %c18_i32 : i32 to vector<1x128xi32>
    %74 = arith.cmpi slt, %16, %73 : vector<1x128xi32>
    %75 = arith.andi %72, %74 : vector<1x128xi1>
    %c0_37 = arith.constant 0 : index
    %c0_38 = arith.constant 0 : index
    %c0_39 = arith.constant 0 : index
    %c14 = arith.constant 14 : index
    %76 = vector.load %arg2[%c0_37, %c0_38, %c0_39, %c14] : memref<1x1x4x256xf32, #tpu.memory_space<vmem>>, vector<1x1x4x128xf32>
    %77 = vector.shape_cast %76 : vector<1x1x4x128xf32> to vector<4x128xf32>
    %cst_40 = arith.constant 0.000000e+00 : f32
    %78 = vector.shape_cast %75 : vector<1x128xi1> to vector<1x128xi1>
    %79 = vector.broadcast %78 : vector<1x128xi1> to vector<4x128xi1>
    %80 = vector.broadcast %cst_40 : f32 to vector<4x128xf32>
    %81 = arith.select %79, %77, %80 : vector<4x128xi1>, vector<4x128xf32>
    %c4 = arith.constant 4 : index
    %c0_41 = arith.constant 0 : index
    %82 = vector.load %arg6[%c4, %c0_41] : memref<196x128xf32, #tpu.memory_space<vmem>>, vector<4x128xf32>
    tpu.vector_store %arg6[%c4, %c0_41], %81 {strides = array<i32>} : memref<196x128xf32, #tpu.memory_space<vmem>>, vector<4x128xf32>,
    %c0_42 = arith.constant 0 : index
    %c0_43 = arith.constant 0 : index
    %c0_44 = arith.constant 0 : index
    %c30 = arith.constant 30 : index
    %83 = vector.load %arg2[%c0_42, %c0_43, %c0_44, %c30] : memref<1x1x4x256xf32, #tpu.memory_space<vmem>>, vector<1x1x4x128xf32>
    %84 = vector.shape_cast %83 : vector<1x1x4x128xf32> to vector<4x128xf32>
    %cst_45 = arith.constant 0.000000e+00 : f32
    %85 = vector.shape_cast %75 : vector<1x128xi1> to vector<1x128xi1>
    %86 = vector.broadcast %85 : vector<1x128xi1> to vector<4x128xi1>
    %87 = vector.broadcast %cst_45 : f32 to vector<4x128xf32>
    %88 = arith.select %86, %84, %87 : vector<4x128xi1>, vector<4x128xf32>
    %c32 = arith.constant 32 : index
    %c0_46 = arith.constant 0 : index
    %89 = vector.load %arg6[%c32, %c0_46] : memref<196x128xf32, #tpu.memory_space<vmem>>, vector<4x128xf32>
    tpu.vector_store %arg6[%c32, %c0_46], %88 {strides = array<i32>} : memref<196x128xf32, #tpu.memory_space<vmem>>, vector<4x128xf32>,
    %c0_47 = arith.constant 0 : index
    %c0_48 = arith.constant 0 : index
    %c0_49 = arith.constant 0 : index
    %c46 = arith.constant 46 : index
    %90 = vector.load %arg2[%c0_47, %c0_48, %c0_49, %c46] : memref<1x1x4x256xf32, #tpu.memory_space<vmem>>, vector<1x1x4x128xf32>
    %91 = vector.shape_cast %90 : vector<1x1x4x128xf32> to vector<4x128xf32>
    %cst_50 = arith.constant 0.000000e+00 : f32
    %92 = vector.shape_cast %75 : vector<1x128xi1> to vector<1x128xi1>
    %93 = vector.broadcast %92 : vector<1x128xi1> to vector<4x128xi1>
    %94 = vector.broadcast %cst_50 : f32 to vector<4x128xf32>
    %95 = arith.select %93, %91, %94 : vector<4x128xi1>, vector<4x128xf32>
    %c60 = arith.constant 60 : index
    %c0_51 = arith.constant 0 : index
    %96 = vector.load %arg6[%c60, %c0_51] : memref<196x128xf32, #tpu.memory_space<vmem>>, vector<4x128xf32>
    tpu.vector_store %arg6[%c60, %c0_51], %95 {strides = array<i32>} : memref<196x128xf32, #tpu.memory_space<vmem>>, vector<4x128xf32>,
    %c0_52 = arith.constant 0 : index
    %c0_53 = arith.constant 0 : index
    %c0_54 = arith.constant 0 : index
    %c62 = arith.constant 62 : index
    %97 = vector.load %arg2[%c0_52, %c0_53, %c0_54, %c62] : memref<1x1x4x256xf32, #tpu.memory_space<vmem>>, vector<1x1x4x128xf32>
    %98 = vector.shape_cast %97 : vector<1x1x4x128xf32> to vector<4x128xf32>
    %cst_55 = arith.constant 0.000000e+00 : f32
    %99 = vector.shape_cast %75 : vector<1x128xi1> to vector<1x128xi1>
    %100 = vector.broadcast %99 : vector<1x128xi1> to vector<4x128xi1>
    %101 = vector.broadcast %cst_55 : f32 to vector<4x128xf32>
    %102 = arith.select %100, %98, %101 : vector<4x128xi1>, vector<4x128xf32>
    %c88 = arith.constant 88 : index
    %c0_56 = arith.constant 0 : index
    %103 = vector.load %arg6[%c88, %c0_56] : memref<196x128xf32, #tpu.memory_space<vmem>>, vector<4x128xf32>
    tpu.vector_store %arg6[%c88, %c0_56], %102 {strides = array<i32>} : memref<196x128xf32, #tpu.memory_space<vmem>>, vector<4x128xf32>,
    %c0_57 = arith.constant 0 : index
    %c0_58 = arith.constant 0 : index
    %c0_59 = arith.constant 0 : index
    %c78 = arith.constant 78 : index
    %104 = vector.load %arg2[%c0_57, %c0_58, %c0_59, %c78] : memref<1x1x4x256xf32, #tpu.memory_space<vmem>>, vector<1x1x4x128xf32>
    %105 = vector.shape_cast %104 : vector<1x1x4x128xf32> to vector<4x128xf32>
    %cst_60 = arith.constant 0.000000e+00 : f32
    %106 = vector.shape_cast %75 : vector<1x128xi1> to vector<1x128xi1>
    %107 = vector.broadcast %106 : vector<1x128xi1> to vector<4x128xi1>
    %108 = vector.broadcast %cst_60 : f32 to vector<4x128xf32>
    %109 = arith.select %107, %105, %108 : vector<4x128xi1>, vector<4x128xf32>
    %c116 = arith.constant 116 : index
    %c0_61 = arith.constant 0 : index
    %110 = vector.load %arg6[%c116, %c0_61] : memref<196x128xf32, #tpu.memory_space<vmem>>, vector<4x128xf32>
    tpu.vector_store %arg6[%c116, %c0_61], %109 {strides = array<i32>} : memref<196x128xf32, #tpu.memory_space<vmem>>, vector<4x128xf32>,
    %c0_62 = arith.constant 0 : index
    %c0_63 = arith.constant 0 : index
    %c0_64 = arith.constant 0 : index
    %c94 = arith.constant 94 : index
    %111 = vector.load %arg2[%c0_62, %c0_63, %c0_64, %c94] : memref<1x1x4x256xf32, #tpu.memory_space<vmem>>, vector<1x1x4x128xf32>
    %112 = vector.shape_cast %111 : vector<1x1x4x128xf32> to vector<4x128xf32>
    %cst_65 = arith.constant 0.000000e+00 : f32
    %113 = vector.shape_cast %75 : vector<1x128xi1> to vector<1x128xi1>
    %114 = vector.broadcast %113 : vector<1x128xi1> to vector<4x128xi1>
    %115 = vector.broadcast %cst_65 : f32 to vector<4x128xf32>
    %116 = arith.select %114, %112, %115 : vector<4x128xi1>, vector<4x128xf32>
    %c144 = arith.constant 144 : index
    %c0_66 = arith.constant 0 : index
    %117 = vector.load %arg6[%c144, %c0_66] : memref<196x128xf32, #tpu.memory_space<vmem>>, vector<4x128xf32>
    tpu.vector_store %arg6[%c144, %c0_66], %116 {strides = array<i32>} : memref<196x128xf32, #tpu.memory_space<vmem>>, vector<4x128xf32>,
    %c0_67 = arith.constant 0 : index
    %c0_68 = arith.constant 0 : index
    %c0_69 = arith.constant 0 : index
    %c110 = arith.constant 110 : index
    %118 = vector.load %arg2[%c0_67, %c0_68, %c0_69, %c110] : memref<1x1x4x256xf32, #tpu.memory_space<vmem>>, vector<1x1x4x128xf32>
    %119 = vector.shape_cast %118 : vector<1x1x4x128xf32> to vector<4x128xf32>
    %cst_70 = arith.constant 0.000000e+00 : f32
    %120 = vector.shape_cast %75 : vector<1x128xi1> to vector<1x128xi1>
    %121 = vector.broadcast %120 : vector<1x128xi1> to vector<4x128xi1>
    %122 = vector.broadcast %cst_70 : f32 to vector<4x128xf32>
    %123 = arith.select %121, %119, %122 : vector<4x128xi1>, vector<4x128xf32>
    %c172 = arith.constant 172 : index
    %c0_71 = arith.constant 0 : index
    %124 = vector.load %arg6[%c172, %c0_71] : memref<196x128xf32, #tpu.memory_space<vmem>>, vector<4x128xf32>
    tpu.vector_store %arg6[%c172, %c0_71], %123 {strides = array<i32>} : memref<196x128xf32, #tpu.memory_space<vmem>>, vector<4x128xf32>,
    %c1_i32_72 = arith.constant 1 : i32
    %125 = vector.broadcast %c1_i32_72 : i32 to vector<1x128xi32>
    %126 = arith.cmpi sge, %16, %125 : vector<1x128xi32>
    %c17_i32 = arith.constant 17 : i32
    %127 = vector.broadcast %c17_i32 : i32 to vector<1x128xi32>
    %128 = arith.cmpi slt, %16, %127 : vector<1x128xi32>
    %129 = arith.andi %126, %128 : vector<1x128xi1>
    %c0_73 = arith.constant 0 : index
    %c0_74 = arith.constant 0 : index
    %c0_75 = arith.constant 0 : index
    %c15 = arith.constant 15 : index
    %130 = vector.load %arg2[%c0_73, %c0_74, %c0_75, %c15] : memref<1x1x4x256xf32, #tpu.memory_space<vmem>>, vector<1x1x4x128xf32>
    %131 = vector.shape_cast %130 : vector<1x1x4x128xf32> to vector<4x128xf32>
    %cst_76 = arith.constant 0.000000e+00 : f32
    %132 = vector.shape_cast %129 : vector<1x128xi1> to vector<1x128xi1>
    %133 = vector.broadcast %132 : vector<1x128xi1> to vector<4x128xi1>
    %134 = vector.broadcast %cst_76 : f32 to vector<4x128xf32>
    %135 = arith.select %133, %131, %134 : vector<4x128xi1>, vector<4x128xf32>
    %c8 = arith.constant 8 : index
    %c0_77 = arith.constant 0 : index
    %136 = vector.load %arg6[%c8, %c0_77] : memref<196x128xf32, #tpu.memory_space<vmem>>, vector<4x128xf32>
    tpu.vector_store %arg6[%c8, %c0_77], %135 {strides = array<i32>} : memref<196x128xf32, #tpu.memory_space<vmem>>, vector<4x128xf32>,
    %c0_78 = arith.constant 0 : index
    %c0_79 = arith.constant 0 : index
    %c0_80 = arith.constant 0 : index
    %c31 = arith.constant 31 : index
    %137 = vector.load %arg2[%c0_78, %c0_79, %c0_80, %c31] : memref<1x1x4x256xf32, #tpu.memory_space<vmem>>, vector<1x1x4x128xf32>
    %138 = vector.shape_cast %137 : vector<1x1x4x128xf32> to vector<4x128xf32>
    %cst_81 = arith.constant 0.000000e+00 : f32
    %139 = vector.shape_cast %129 : vector<1x128xi1> to vector<1x128xi1>
    %140 = vector.broadcast %139 : vector<1x128xi1> to vector<4x128xi1>
    %141 = vector.broadcast %cst_81 : f32 to vector<4x128xf32>
    %142 = arith.select %140, %138, %141 : vector<4x128xi1>, vector<4x128xf32>
    %c36 = arith.constant 36 : index
    %c0_82 = arith.constant 0 : index
    %143 = vector.load %arg6[%c36, %c0_82] : memref<196x128xf32, #tpu.memory_space<vmem>>, vector<4x128xf32>
    tpu.vector_store %arg6[%c36, %c0_82], %142 {strides = array<i32>} : memref<196x128xf32, #tpu.memory_space<vmem>>, vector<4x128xf32>,
    %c0_83 = arith.constant 0 : index
    %c0_84 = arith.constant 0 : index
    %c0_85 = arith.constant 0 : index
    %c47 = arith.constant 47 : index
    %144 = vector.load %arg2[%c0_83, %c0_84, %c0_85, %c47] : memref<1x1x4x256xf32, #tpu.memory_space<vmem>>, vector<1x1x4x128xf32>
    %145 = vector.shape_cast %144 : vector<1x1x4x128xf32> to vector<4x128xf32>
    %cst_86 = arith.constant 0.000000e+00 : f32
    %146 = vector.shape_cast %129 : vector<1x128xi1> to vector<1x128xi1>
    %147 = vector.broadcast %146 : vector<1x128xi1> to vector<4x128xi1>
    %148 = vector.broadcast %cst_86 : f32 to vector<4x128xf32>
    %149 = arith.select %147, %145, %148 : vector<4x128xi1>, vector<4x128xf32>
    %c64 = arith.constant 64 : index
    %c0_87 = arith.constant 0 : index
    %150 = vector.load %arg6[%c64, %c0_87] : memref<196x128xf32, #tpu.memory_space<vmem>>, vector<4x128xf32>
    tpu.vector_store %arg6[%c64, %c0_87], %149 {strides = array<i32>} : memref<196x128xf32, #tpu.memory_space<vmem>>, vector<4x128xf32>,
    %c0_88 = arith.constant 0 : index
    %c0_89 = arith.constant 0 : index
    %c0_90 = arith.constant 0 : index
    %c63 = arith.constant 63 : index
    %151 = vector.load %arg2[%c0_88, %c0_89, %c0_90, %c63] : memref<1x1x4x256xf32, #tpu.memory_space<vmem>>, vector<1x1x4x128xf32>
    %152 = vector.shape_cast %151 : vector<1x1x4x128xf32> to vector<4x128xf32>
    %cst_91 = arith.constant 0.000000e+00 : f32
    %153 = vector.shape_cast %129 : vector<1x128xi1> to vector<1x128xi1>
    %154 = vector.broadcast %153 : vector<1x128xi1> to vector<4x128xi1>
    %155 = vector.broadcast %cst_91 : f32 to vector<4x128xf32>
    %156 = arith.select %154, %152, %155 : vector<4x128xi1>, vector<4x128xf32>
    %c92 = arith.constant 92 : index
    %c0_92 = arith.constant 0 : index
    %157 = vector.load %arg6[%c92, %c0_92] : memref<196x128xf32, #tpu.memory_space<vmem>>, vector<4x128xf32>
    tpu.vector_store %arg6[%c92, %c0_92], %156 {strides = array<i32>} : memref<196x128xf32, #tpu.memory_space<vmem>>, vector<4x128xf32>,
    %c0_93 = arith.constant 0 : index
    %c0_94 = arith.constant 0 : index
    %c0_95 = arith.constant 0 : index
    %c79 = arith.constant 79 : index
    %158 = vector.load %arg2[%c0_93, %c0_94, %c0_95, %c79] : memref<1x1x4x256xf32, #tpu.memory_space<vmem>>, vector<1x1x4x128xf32>
    %159 = vector.shape_cast %158 : vector<1x1x4x128xf32> to vector<4x128xf32>
    %cst_96 = arith.constant 0.000000e+00 : f32
    %160 = vector.shape_cast %129 : vector<1x128xi1> to vector<1x128xi1>
    %161 = vector.broadcast %160 : vector<1x128xi1> to vector<4x128xi1>
    %162 = vector.broadcast %cst_96 : f32 to vector<4x128xf32>
    %163 = arith.select %161, %159, %162 : vector<4x128xi1>, vector<4x128xf32>
    %c120 = arith.constant 120 : index
    %c0_97 = arith.constant 0 : index
    %164 = vector.load %arg6[%c120, %c0_97] : memref<196x128xf32, #tpu.memory_space<vmem>>, vector<4x128xf32>
    tpu.vector_store %arg6[%c120, %c0_97], %163 {strides = array<i32>} : memref<196x128xf32, #tpu.memory_space<vmem>>, vector<4x128xf32>,
    %c0_98 = arith.constant 0 : index
    %c0_99 = arith.constant 0 : index
    %c0_100 = arith.constant 0 : index
    %c95 = arith.constant 95 : index
    %165 = vector.load %arg2[%c0_98, %c0_99, %c0_100, %c95] : memref<1x1x4x256xf32, #tpu.memory_space<vmem>>, vector<1x1x4x128xf32>
    %166 = vector.shape_cast %165 : vector<1x1x4x128xf32> to vector<4x128xf32>
    %cst_101 = arith.constant 0.000000e+00 : f32
    %167 = vector.shape_cast %129 : vector<1x128xi1> to vector<1x128xi1>
    %168 = vector.broadcast %167 : vector<1x128xi1> to vector<4x128xi1>
    %169 = vector.broadcast %cst_101 : f32 to vector<4x128xf32>
    %170 = arith.select %168, %166, %169 : vector<4x128xi1>, vector<4x128xf32>
    %c148 = arith.constant 148 : index
    %c0_102 = arith.constant 0 : index
    %171 = vector.load %arg6[%c148, %c0_102] : memref<196x128xf32, #tpu.memory_space<vmem>>, vector<4x128xf32>
    tpu.vector_store %arg6[%c148, %c0_102], %170 {strides = array<i32>} : memref<196x128xf32, #tpu.memory_space<vmem>>, vector<4x128xf32>,
    %c0_103 = arith.constant 0 : index
    %c0_104 = arith.constant 0 : index
    %c0_105 = arith.constant 0 : index
    %c111 = arith.constant 111 : index
    %172 = vector.load %arg2[%c0_103, %c0_104, %c0_105, %c111] : memref<1x1x4x256xf32, #tpu.memory_space<vmem>>, vector<1x1x4x128xf32>
    %173 = vector.shape_cast %172 : vector<1x1x4x128xf32> to vector<4x128xf32>
    %cst_106 = arith.constant 0.000000e+00 : f32
    %174 = vector.shape_cast %129 : vector<1x128xi1> to vector<1x128xi1>
    %175 = vector.broadcast %174 : vector<1x128xi1> to vector<4x128xi1>
    %176 = vector.broadcast %cst_106 : f32 to vector<4x128xf32>
    %177 = arith.select %175, %173, %176 : vector<4x128xi1>, vector<4x128xf32>
    %c176 = arith.constant 176 : index
    %c0_107 = arith.constant 0 : index
    %178 = vector.load %arg6[%c176, %c0_107] : memref<196x128xf32, #tpu.memory_space<vmem>>, vector<4x128xf32>
    tpu.vector_store %arg6[%c176, %c0_107], %177 {strides = array<i32>} : memref<196x128xf32, #tpu.memory_space<vmem>>, vector<4x128xf32>,
    %c0_108 = arith.constant 0 : index
    %c0_109 = arith.constant 0 : index
    %c0_110 = arith.constant 0 : index
    %c16 = arith.constant 16 : index
    %179 = vector.load %arg2[%c0_108, %c0_109, %c0_110, %c16] : memref<1x1x4x256xf32, #tpu.memory_space<vmem>>, vector<1x1x4x128xf32>
    %180 = vector.shape_cast %179 : vector<1x1x4x128xf32> to vector<4x128xf32>
    %c12 = arith.constant 12 : index
    %c0_111 = arith.constant 0 : index
    %181 = vector.load %arg6[%c12, %c0_111] : memref<196x128xf32, #tpu.memory_space<vmem>>, vector<4x128xf32>
    tpu.vector_store %arg6[%c12, %c0_111], %180 {strides = array<i32>} : memref<196x128xf32, #tpu.memory_space<vmem>>, vector<4x128xf32>,
    %c0_112 = arith.constant 0 : index
    %c0_113 = arith.constant 0 : index
    %c0_114 = arith.constant 0 : index
    %c32_115 = arith.constant 32 : index
    %182 = vector.load %arg2[%c0_112, %c0_113, %c0_114, %c32_115] : memref<1x1x4x256xf32, #tpu.memory_space<vmem>>, vector<1x1x4x128xf32>
    %183 = vector.shape_cast %182 : vector<1x1x4x128xf32> to vector<4x128xf32>
    %c40 = arith.constant 40 : index
    %c0_116 = arith.constant 0 : index
    %184 = vector.load %arg6[%c40, %c0_116] : memref<196x128xf32, #tpu.memory_space<vmem>>, vector<4x128xf32>
    tpu.vector_store %arg6[%c40, %c0_116], %183 {strides = array<i32>} : memref<196x128xf32, #tpu.memory_space<vmem>>, vector<4x128xf32>,
    %c0_117 = arith.constant 0 : index
    %c0_118 = arith.constant 0 : index
    %c0_119 = arith.constant 0 : index
    %c48 = arith.constant 48 : index
    %185 = vector.load %arg2[%c0_117, %c0_118, %c0_119, %c48] : memref<1x1x4x256xf32, #tpu.memory_space<vmem>>, vector<1x1x4x128xf32>
    %186 = vector.shape_cast %185 : vector<1x1x4x128xf32> to vector<4x128xf32>
    %c68 = arith.constant 68 : index
    %c0_120 = arith.constant 0 : index
    %187 = vector.load %arg6[%c68, %c0_120] : memref<196x128xf32, #tpu.memory_space<vmem>>, vector<4x128xf32>
    tpu.vector_store %arg6[%c68, %c0_120], %186 {strides = array<i32>} : memref<196x128xf32, #tpu.memory_space<vmem>>, vector<4x128xf32>,
    %c0_121 = arith.constant 0 : index
    %c0_122 = arith.constant 0 : index
    %c0_123 = arith.constant 0 : index
    %c64_124 = arith.constant 64 : index
    %188 = vector.load %arg2[%c0_121, %c0_122, %c0_123, %c64_124] : memref<1x1x4x256xf32, #tpu.memory_space<vmem>>, vector<1x1x4x128xf32>
    %189 = vector.shape_cast %188 : vector<1x1x4x128xf32> to vector<4x128xf32>
    %c96 = arith.constant 96 : index
    %c0_125 = arith.constant 0 : index
    %190 = vector.load %arg6[%c96, %c0_125] : memref<196x128xf32, #tpu.memory_space<vmem>>, vector<4x128xf32>
    tpu.vector_store %arg6[%c96, %c0_125], %189 {strides = array<i32>} : memref<196x128xf32, #tpu.memory_space<vmem>>, vector<4x128xf32>,
    %c0_126 = arith.constant 0 : index
    %c0_127 = arith.constant 0 : index
    %c0_128 = arith.constant 0 : index
    %c80 = arith.constant 80 : index
    %191 = vector.load %arg2[%c0_126, %c0_127, %c0_128, %c80] : memref<1x1x4x256xf32, #tpu.memory_space<vmem>>, vector<1x1x4x128xf32>
    %192 = vector.shape_cast %191 : vector<1x1x4x128xf32> to vector<4x128xf32>
    %c124 = arith.constant 124 : index
    %c0_129 = arith.constant 0 : index
    %193 = vector.load %arg6[%c124, %c0_129] : memref<196x128xf32, #tpu.memory_space<vmem>>, vector<4x128xf32>
    tpu.vector_store %arg6[%c124, %c0_129], %192 {strides = array<i32>} : memref<196x128xf32, #tpu.memory_space<vmem>>, vector<4x128xf32>,
    %c0_130 = arith.constant 0 : index
    %c0_131 = arith.constant 0 : index
    %c0_132 = arith.constant 0 : index
    %c96_133 = arith.constant 96 : index
    %194 = vector.load %arg2[%c0_130, %c0_131, %c0_132, %c96_133] : memref<1x1x4x256xf32, #tpu.memory_space<vmem>>, vector<1x1x4x128xf32>
    %195 = vector.shape_cast %194 : vector<1x1x4x128xf32> to vector<4x128xf32>
    %c152 = arith.constant 152 : index
    %c0_134 = arith.constant 0 : index
    %196 = vector.load %arg6[%c152, %c0_134] : memref<196x128xf32, #tpu.memory_space<vmem>>, vector<4x128xf32>
    tpu.vector_store %arg6[%c152, %c0_134], %195 {strides = array<i32>} : memref<196x128xf32, #tpu.memory_space<vmem>>, vector<4x128xf32>,
    %c0_135 = arith.constant 0 : index
    %c0_136 = arith.constant 0 : index
    %c0_137 = arith.constant 0 : index
    %c112_138 = arith.constant 112 : index
    %197 = vector.load %arg2[%c0_135, %c0_136, %c0_137, %c112_138] : memref<1x1x4x256xf32, #tpu.memory_space<vmem>>, vector<1x1x4x128xf32>
    %198 = vector.shape_cast %197 : vector<1x1x4x128xf32> to vector<4x128xf32>
    %c180 = arith.constant 180 : index
    %c0_139 = arith.constant 0 : index
    %199 = vector.load %arg6[%c180, %c0_139] : memref<196x128xf32, #tpu.memory_space<vmem>>, vector<4x128xf32>
    tpu.vector_store %arg6[%c180, %c0_139], %198 {strides = array<i32>} : memref<196x128xf32, #tpu.memory_space<vmem>>, vector<4x128xf32>,
    %c-1_i32 = arith.constant -1 : i32
    %200 = vector.broadcast %c-1_i32 : i32 to vector<1x128xi32>
    %201 = arith.cmpi sge, %16, %200 : vector<1x128xi32>
    %c15_i32 = arith.constant 15 : i32
    %202 = vector.broadcast %c15_i32 : i32 to vector<1x128xi32>
    %203 = arith.cmpi slt, %16, %202 : vector<1x128xi32>
    %204 = arith.andi %201, %203 : vector<1x128xi1>
    %c0_140 = arith.constant 0 : index
    %c0_141 = arith.constant 0 : index
    %c0_142 = arith.constant 0 : index
    %c17 = arith.constant 17 : index
    %205 = vector.load %arg2[%c0_140, %c0_141, %c0_142, %c17] : memref<1x1x4x256xf32, #tpu.memory_space<vmem>>, vector<1x1x4x128xf32>
    %206 = vector.shape_cast %205 : vector<1x1x4x128xf32> to vector<4x128xf32>
    %cst_143 = arith.constant 0.000000e+00 : f32
    %207 = vector.shape_cast %204 : vector<1x128xi1> to vector<1x128xi1>
    %208 = vector.broadcast %207 : vector<1x128xi1> to vector<4x128xi1>
    %209 = vector.broadcast %cst_143 : f32 to vector<4x128xf32>
    %210 = arith.select %208, %206, %209 : vector<4x128xi1>, vector<4x128xf32>
    %c16_144 = arith.constant 16 : index
    %c0_145 = arith.constant 0 : index
    %211 = vector.load %arg6[%c16_144, %c0_145] : memref<196x128xf32, #tpu.memory_space<vmem>>, vector<4x128xf32>
    tpu.vector_store %arg6[%c16_144, %c0_145], %210 {strides = array<i32>} : memref<196x128xf32, #tpu.memory_space<vmem>>, vector<4x128xf32>,
    %c0_146 = arith.constant 0 : index
    %c0_147 = arith.constant 0 : index
    %c0_148 = arith.constant 0 : index
    %c33 = arith.constant 33 : index
    %212 = vector.load %arg2[%c0_146, %c0_147, %c0_148, %c33] : memref<1x1x4x256xf32, #tpu.memory_space<vmem>>, vector<1x1x4x128xf32>
    %213 = vector.shape_cast %212 : vector<1x1x4x128xf32> to vector<4x128xf32>
    %cst_149 = arith.constant 0.000000e+00 : f32
    %214 = vector.shape_cast %204 : vector<1x128xi1> to vector<1x128xi1>
    %215 = vector.broadcast %214 : vector<1x128xi1> to vector<4x128xi1>
    %216 = vector.broadcast %cst_149 : f32 to vector<4x128xf32>
    %217 = arith.select %215, %213, %216 : vector<4x128xi1>, vector<4x128xf32>
    %c44 = arith.constant 44 : index
    %c0_150 = arith.constant 0 : index
    %218 = vector.load %arg6[%c44, %c0_150] : memref<196x128xf32, #tpu.memory_space<vmem>>, vector<4x128xf32>
    tpu.vector_store %arg6[%c44, %c0_150], %217 {strides = array<i32>} : memref<196x128xf32, #tpu.memory_space<vmem>>, vector<4x128xf32>,
    %c0_151 = arith.constant 0 : index
    %c0_152 = arith.constant 0 : index
    %c0_153 = arith.constant 0 : index
    %c49 = arith.constant 49 : index
    %219 = vector.load %arg2[%c0_151, %c0_152, %c0_153, %c49] : memref<1x1x4x256xf32, #tpu.memory_space<vmem>>, vector<1x1x4x128xf32>
    %220 = vector.shape_cast %219 : vector<1x1x4x128xf32> to vector<4x128xf32>
    %cst_154 = arith.constant 0.000000e+00 : f32
    %221 = vector.shape_cast %204 : vector<1x128xi1> to vector<1x128xi1>
    %222 = vector.broadcast %221 : vector<1x128xi1> to vector<4x128xi1>
    %223 = vector.broadcast %cst_154 : f32 to vector<4x128xf32>
    %224 = arith.select %222, %220, %223 : vector<4x128xi1>, vector<4x128xf32>
    %c72 = arith.constant 72 : index
    %c0_155 = arith.constant 0 : index
    %225 = vector.load %arg6[%c72, %c0_155] : memref<196x128xf32, #tpu.memory_space<vmem>>, vector<4x128xf32>
    tpu.vector_store %arg6[%c72, %c0_155], %224 {strides = array<i32>} : memref<196x128xf32, #tpu.memory_space<vmem>>, vector<4x128xf32>,
    %c0_156 = arith.constant 0 : index
    %c0_157 = arith.constant 0 : index
    %c0_158 = arith.constant 0 : index
    %c65 = arith.constant 65 : index
    %226 = vector.load %arg2[%c0_156, %c0_157, %c0_158, %c65] : memref<1x1x4x256xf32, #tpu.memory_space<vmem>>, vector<1x1x4x128xf32>
    %227 = vector.shape_cast %226 : vector<1x1x4x128xf32> to vector<4x128xf32>
    %cst_159 = arith.constant 0.000000e+00 : f32
    %228 = vector.shape_cast %204 : vector<1x128xi1> to vector<1x128xi1>
    %229 = vector.broadcast %228 : vector<1x128xi1> to vector<4x128xi1>
    %230 = vector.broadcast %cst_159 : f32 to vector<4x128xf32>
    %231 = arith.select %229, %227, %230 : vector<4x128xi1>, vector<4x128xf32>
    %c100 = arith.constant 100 : index
    %c0_160 = arith.constant 0 : index
    %232 = vector.load %arg6[%c100, %c0_160] : memref<196x128xf32, #tpu.memory_space<vmem>>, vector<4x128xf32>
    tpu.vector_store %arg6[%c100, %c0_160], %231 {strides = array<i32>} : memref<196x128xf32, #tpu.memory_space<vmem>>, vector<4x128xf32>,
    %c0_161 = arith.constant 0 : index
    %c0_162 = arith.constant 0 : index
    %c0_163 = arith.constant 0 : index
    %c81 = arith.constant 81 : index
    %233 = vector.load %arg2[%c0_161, %c0_162, %c0_163, %c81] : memref<1x1x4x256xf32, #tpu.memory_space<vmem>>, vector<1x1x4x128xf32>
    %234 = vector.shape_cast %233 : vector<1x1x4x128xf32> to vector<4x128xf32>
    %cst_164 = arith.constant 0.000000e+00 : f32
    %235 = vector.shape_cast %204 : vector<1x128xi1> to vector<1x128xi1>
    %236 = vector.broadcast %235 : vector<1x128xi1> to vector<4x128xi1>
    %237 = vector.broadcast %cst_164 : f32 to vector<4x128xf32>
    %238 = arith.select %236, %234, %237 : vector<4x128xi1>, vector<4x128xf32>
    %c128 = arith.constant 128 : index
    %c0_165 = arith.constant 0 : index
    %239 = vector.load %arg6[%c128, %c0_165] : memref<196x128xf32, #tpu.memory_space<vmem>>, vector<4x128xf32>
    tpu.vector_store %arg6[%c128, %c0_165], %238 {strides = array<i32>} : memref<196x128xf32, #tpu.memory_space<vmem>>, vector<4x128xf32>,
    %c0_166 = arith.constant 0 : index
    %c0_167 = arith.constant 0 : index
    %c0_168 = arith.constant 0 : index
    %c97 = arith.constant 97 : index
    %240 = vector.load %arg2[%c0_166, %c0_167, %c0_168, %c97] : memref<1x1x4x256xf32, #tpu.memory_space<vmem>>, vector<1x1x4x128xf32>
    %241 = vector.shape_cast %240 : vector<1x1x4x128xf32> to vector<4x128xf32>
    %cst_169 = arith.constant 0.000000e+00 : f32
    %242 = vector.shape_cast %204 : vector<1x128xi1> to vector<1x128xi1>
    %243 = vector.broadcast %242 : vector<1x128xi1> to vector<4x128xi1>
    %244 = vector.broadcast %cst_169 : f32 to vector<4x128xf32>
    %245 = arith.select %243, %241, %244 : vector<4x128xi1>, vector<4x128xf32>
    %c156 = arith.constant 156 : index
    %c0_170 = arith.constant 0 : index
    %246 = vector.load %arg6[%c156, %c0_170] : memref<196x128xf32, #tpu.memory_space<vmem>>, vector<4x128xf32>
    tpu.vector_store %arg6[%c156, %c0_170], %245 {strides = array<i32>} : memref<196x128xf32, #tpu.memory_space<vmem>>, vector<4x128xf32>,
    %c0_171 = arith.constant 0 : index
    %c0_172 = arith.constant 0 : index
    %c0_173 = arith.constant 0 : index
    %c113 = arith.constant 113 : index
    %247 = vector.load %arg2[%c0_171, %c0_172, %c0_173, %c113] : memref<1x1x4x256xf32, #tpu.memory_space<vmem>>, vector<1x1x4x128xf32>
    %248 = vector.shape_cast %247 : vector<1x1x4x128xf32> to vector<4x128xf32>
    %cst_174 = arith.constant 0.000000e+00 : f32
    %249 = vector.shape_cast %204 : vector<1x128xi1> to vector<1x128xi1>
    %250 = vector.broadcast %249 : vector<1x128xi1> to vector<4x128xi1>
    %251 = vector.broadcast %cst_174 : f32 to vector<4x128xf32>
    %252 = arith.select %250, %248, %251 : vector<4x128xi1>, vector<4x128xf32>
    %c184 = arith.constant 184 : index
    %c0_175 = arith.constant 0 : index
    %253 = vector.load %arg6[%c184, %c0_175] : memref<196x128xf32, #tpu.memory_space<vmem>>, vector<4x128xf32>
    tpu.vector_store %arg6[%c184, %c0_175], %252 {strides = array<i32>} : memref<196x128xf32, #tpu.memory_space<vmem>>, vector<4x128xf32>,
    %c-2_i32 = arith.constant -2 : i32
    %254 = vector.broadcast %c-2_i32 : i32 to vector<1x128xi32>
    %255 = arith.cmpi sge, %16, %254 : vector<1x128xi32>
    %c14_i32 = arith.constant 14 : i32
    %256 = vector.broadcast %c14_i32 : i32 to vector<1x128xi32>
    %257 = arith.cmpi slt, %16, %256 : vector<1x128xi32>
    %258 = arith.andi %255, %257 : vector<1x128xi1>
    %c0_176 = arith.constant 0 : index
    %c0_177 = arith.constant 0 : index
    %c0_178 = arith.constant 0 : index
    %c18 = arith.constant 18 : index
    %259 = vector.load %arg2[%c0_176, %c0_177, %c0_178, %c18] : memref<1x1x4x256xf32, #tpu.memory_space<vmem>>, vector<1x1x4x128xf32>
    %260 = vector.shape_cast %259 : vector<1x1x4x128xf32> to vector<4x128xf32>
    %cst_179 = arith.constant 0.000000e+00 : f32
    %261 = vector.shape_cast %258 : vector<1x128xi1> to vector<1x128xi1>
    %262 = vector.broadcast %261 : vector<1x128xi1> to vector<4x128xi1>
    %263 = vector.broadcast %cst_179 : f32 to vector<4x128xf32>
    %264 = arith.select %262, %260, %263 : vector<4x128xi1>, vector<4x128xf32>
    %c20 = arith.constant 20 : index
    %c0_180 = arith.constant 0 : index
    %265 = vector.load %arg6[%c20, %c0_180] : memref<196x128xf32, #tpu.memory_space<vmem>>, vector<4x128xf32>
    tpu.vector_store %arg6[%c20, %c0_180], %264 {strides = array<i32>} : memref<196x128xf32, #tpu.memory_space<vmem>>, vector<4x128xf32>,
    %c0_181 = arith.constant 0 : index
    %c0_182 = arith.constant 0 : index
    %c0_183 = arith.constant 0 : index
    %c34 = arith.constant 34 : index
    %266 = vector.load %arg2[%c0_181, %c0_182, %c0_183, %c34] : memref<1x1x4x256xf32, #tpu.memory_space<vmem>>, vector<1x1x4x128xf32>
    %267 = vector.shape_cast %266 : vector<1x1x4x128xf32> to vector<4x128xf32>
    %cst_184 = arith.constant 0.000000e+00 : f32
    %268 = vector.shape_cast %258 : vector<1x128xi1> to vector<1x128xi1>
    %269 = vector.broadcast %268 : vector<1x128xi1> to vector<4x128xi1>
    %270 = vector.broadcast %cst_184 : f32 to vector<4x128xf32>
    %271 = arith.select %269, %267, %270 : vector<4x128xi1>, vector<4x128xf32>
    %c48_185 = arith.constant 48 : index
    %c0_186 = arith.constant 0 : index
    %272 = vector.load %arg6[%c48_185, %c0_186] : memref<196x128xf32, #tpu.memory_space<vmem>>, vector<4x128xf32>
    tpu.vector_store %arg6[%c48_185, %c0_186], %271 {strides = array<i32>} : memref<196x128xf32, #tpu.memory_space<vmem>>, vector<4x128xf32>,
    %c0_187 = arith.constant 0 : index
    %c0_188 = arith.constant 0 : index
    %c0_189 = arith.constant 0 : index
    %c50 = arith.constant 50 : index
    %273 = vector.load %arg2[%c0_187, %c0_188, %c0_189, %c50] : memref<1x1x4x256xf32, #tpu.memory_space<vmem>>, vector<1x1x4x128xf32>
    %274 = vector.shape_cast %273 : vector<1x1x4x128xf32> to vector<4x128xf32>
    %cst_190 = arith.constant 0.000000e+00 : f32
    %275 = vector.shape_cast %258 : vector<1x128xi1> to vector<1x128xi1>
    %276 = vector.broadcast %275 : vector<1x128xi1> to vector<4x128xi1>
    %277 = vector.broadcast %cst_190 : f32 to vector<4x128xf32>
    %278 = arith.select %276, %274, %277 : vector<4x128xi1>, vector<4x128xf32>
    %c76 = arith.constant 76 : index
    %c0_191 = arith.constant 0 : index
    %279 = vector.load %arg6[%c76, %c0_191] : memref<196x128xf32, #tpu.memory_space<vmem>>, vector<4x128xf32>
    tpu.vector_store %arg6[%c76, %c0_191], %278 {strides = array<i32>} : memref<196x128xf32, #tpu.memory_space<vmem>>, vector<4x128xf32>,
    %c0_192 = arith.constant 0 : index
    %c0_193 = arith.constant 0 : index
    %c0_194 = arith.constant 0 : index
    %c66 = arith.constant 66 : index
    %280 = vector.load %arg2[%c0_192, %c0_193, %c0_194, %c66] : memref<1x1x4x256xf32, #tpu.memory_space<vmem>>, vector<1x1x4x128xf32>
    %281 = vector.shape_cast %280 : vector<1x1x4x128xf32> to vector<4x128xf32>
    %cst_195 = arith.constant 0.000000e+00 : f32
    %282 = vector.shape_cast %258 : vector<1x128xi1> to vector<1x128xi1>
    %283 = vector.broadcast %282 : vector<1x128xi1> to vector<4x128xi1>
    %284 = vector.broadcast %cst_195 : f32 to vector<4x128xf32>
    %285 = arith.select %283, %281, %284 : vector<4x128xi1>, vector<4x128xf32>
    %c104 = arith.constant 104 : index
    %c0_196 = arith.constant 0 : index
    %286 = vector.load %arg6[%c104, %c0_196] : memref<196x128xf32, #tpu.memory_space<vmem>>, vector<4x128xf32>
    tpu.vector_store %arg6[%c104, %c0_196], %285 {strides = array<i32>} : memref<196x128xf32, #tpu.memory_space<vmem>>, vector<4x128xf32>,
    %c0_197 = arith.constant 0 : index
    %c0_198 = arith.constant 0 : index
    %c0_199 = arith.constant 0 : index
    %c82 = arith.constant 82 : index
    %287 = vector.load %arg2[%c0_197, %c0_198, %c0_199, %c82] : memref<1x1x4x256xf32, #tpu.memory_space<vmem>>, vector<1x1x4x128xf32>
    %288 = vector.shape_cast %287 : vector<1x1x4x128xf32> to vector<4x128xf32>
    %cst_200 = arith.constant 0.000000e+00 : f32
    %289 = vector.shape_cast %258 : vector<1x128xi1> to vector<1x128xi1>
    %290 = vector.broadcast %289 : vector<1x128xi1> to vector<4x128xi1>
    %291 = vector.broadcast %cst_200 : f32 to vector<4x128xf32>
    %292 = arith.select %290, %288, %291 : vector<4x128xi1>, vector<4x128xf32>
    %c132 = arith.constant 132 : index
    %c0_201 = arith.constant 0 : index
    %293 = vector.load %arg6[%c132, %c0_201] : memref<196x128xf32, #tpu.memory_space<vmem>>, vector<4x128xf32>
    tpu.vector_store %arg6[%c132, %c0_201], %292 {strides = array<i32>} : memref<196x128xf32, #tpu.memory_space<vmem>>, vector<4x128xf32>,
    %c0_202 = arith.constant 0 : index
    %c0_203 = arith.constant 0 : index
    %c0_204 = arith.constant 0 : index
    %c98 = arith.constant 98 : index
    %294 = vector.load %arg2[%c0_202, %c0_203, %c0_204, %c98] : memref<1x1x4x256xf32, #tpu.memory_space<vmem>>, vector<1x1x4x128xf32>
    %295 = vector.shape_cast %294 : vector<1x1x4x128xf32> to vector<4x128xf32>
    %cst_205 = arith.constant 0.000000e+00 : f32
    %296 = vector.shape_cast %258 : vector<1x128xi1> to vector<1x128xi1>
    %297 = vector.broadcast %296 : vector<1x128xi1> to vector<4x128xi1>
    %298 = vector.broadcast %cst_205 : f32 to vector<4x128xf32>
    %299 = arith.select %297, %295, %298 : vector<4x128xi1>, vector<4x128xf32>
    %c160 = arith.constant 160 : index
    %c0_206 = arith.constant 0 : index
    %300 = vector.load %arg6[%c160, %c0_206] : memref<196x128xf32, #tpu.memory_space<vmem>>, vector<4x128xf32>
    tpu.vector_store %arg6[%c160, %c0_206], %299 {strides = array<i32>} : memref<196x128xf32, #tpu.memory_space<vmem>>, vector<4x128xf32>,
    %c0_207 = arith.constant 0 : index
    %c0_208 = arith.constant 0 : index
    %c0_209 = arith.constant 0 : index
    %c114 = arith.constant 114 : index
    %301 = vector.load %arg2[%c0_207, %c0_208, %c0_209, %c114] : memref<1x1x4x256xf32, #tpu.memory_space<vmem>>, vector<1x1x4x128xf32>
    %302 = vector.shape_cast %301 : vector<1x1x4x128xf32> to vector<4x128xf32>
    %cst_210 = arith.constant 0.000000e+00 : f32
    %303 = vector.shape_cast %258 : vector<1x128xi1> to vector<1x128xi1>
    %304 = vector.broadcast %303 : vector<1x128xi1> to vector<4x128xi1>
    %305 = vector.broadcast %cst_210 : f32 to vector<4x128xf32>
    %306 = arith.select %304, %302, %305 : vector<4x128xi1>, vector<4x128xf32>
    %c188 = arith.constant 188 : index
    %c0_211 = arith.constant 0 : index
    %307 = vector.load %arg6[%c188, %c0_211] : memref<196x128xf32, #tpu.memory_space<vmem>>, vector<4x128xf32>
    tpu.vector_store %arg6[%c188, %c0_211], %306 {strides = array<i32>} : memref<196x128xf32, #tpu.memory_space<vmem>>, vector<4x128xf32>,
    %c-3_i32 = arith.constant -3 : i32
    %308 = vector.broadcast %c-3_i32 : i32 to vector<1x128xi32>
    %309 = arith.cmpi sge, %16, %308 : vector<1x128xi32>
    %c13_i32 = arith.constant 13 : i32
    %310 = vector.broadcast %c13_i32 : i32 to vector<1x128xi32>
    %311 = arith.cmpi slt, %16, %310 : vector<1x128xi32>
    %312 = arith.andi %309, %311 : vector<1x128xi1>
    %c0_212 = arith.constant 0 : index
    %c0_213 = arith.constant 0 : index
    %c0_214 = arith.constant 0 : index
    %c19 = arith.constant 19 : index
    %313 = vector.load %arg2[%c0_212, %c0_213, %c0_214, %c19] : memref<1x1x4x256xf32, #tpu.memory_space<vmem>>, vector<1x1x4x128xf32>
    %314 = vector.shape_cast %313 : vector<1x1x4x128xf32> to vector<4x128xf32>
    %cst_215 = arith.constant 0.000000e+00 : f32
    %315 = vector.shape_cast %312 : vector<1x128xi1> to vector<1x128xi1>
    %316 = vector.broadcast %315 : vector<1x128xi1> to vector<4x128xi1>
    %317 = vector.broadcast %cst_215 : f32 to vector<4x128xf32>
    %318 = arith.select %316, %314, %317 : vector<4x128xi1>, vector<4x128xf32>
    %c24 = arith.constant 24 : index
    %c0_216 = arith.constant 0 : index
    %319 = vector.load %arg6[%c24, %c0_216] : memref<196x128xf32, #tpu.memory_space<vmem>>, vector<4x128xf32>
    tpu.vector_store %arg6[%c24, %c0_216], %318 {strides = array<i32>} : memref<196x128xf32, #tpu.memory_space<vmem>>, vector<4x128xf32>,
    %c0_217 = arith.constant 0 : index
    %c0_218 = arith.constant 0 : index
    %c0_219 = arith.constant 0 : index
    %c35 = arith.constant 35 : index
    %320 = vector.load %arg2[%c0_217, %c0_218, %c0_219, %c35] : memref<1x1x4x256xf32, #tpu.memory_space<vmem>>, vector<1x1x4x128xf32>
    %321 = vector.shape_cast %320 : vector<1x1x4x128xf32> to vector<4x128xf32>
    %cst_220 = arith.constant 0.000000e+00 : f32
    %322 = vector.shape_cast %312 : vector<1x128xi1> to vector<1x128xi1>
    %323 = vector.broadcast %322 : vector<1x128xi1> to vector<4x128xi1>
    %324 = vector.broadcast %cst_220 : f32 to vector<4x128xf32>
    %325 = arith.select %323, %321, %324 : vector<4x128xi1>, vector<4x128xf32>
    %c52 = arith.constant 52 : index
    %c0_221 = arith.constant 0 : index
    %326 = vector.load %arg6[%c52, %c0_221] : memref<196x128xf32, #tpu.memory_space<vmem>>, vector<4x128xf32>
    tpu.vector_store %arg6[%c52, %c0_221], %325 {strides = array<i32>} : memref<196x128xf32, #tpu.memory_space<vmem>>, vector<4x128xf32>,
    %c0_222 = arith.constant 0 : index
    %c0_223 = arith.constant 0 : index
    %c0_224 = arith.constant 0 : index
    %c51 = arith.constant 51 : index
    %327 = vector.load %arg2[%c0_222, %c0_223, %c0_224, %c51] : memref<1x1x4x256xf32, #tpu.memory_space<vmem>>, vector<1x1x4x128xf32>
    %328 = vector.shape_cast %327 : vector<1x1x4x128xf32> to vector<4x128xf32>
    %cst_225 = arith.constant 0.000000e+00 : f32
    %329 = vector.shape_cast %312 : vector<1x128xi1> to vector<1x128xi1>
    %330 = vector.broadcast %329 : vector<1x128xi1> to vector<4x128xi1>
    %331 = vector.broadcast %cst_225 : f32 to vector<4x128xf32>
    %332 = arith.select %330, %328, %331 : vector<4x128xi1>, vector<4x128xf32>
    %c80_226 = arith.constant 80 : index
    %c0_227 = arith.constant 0 : index
    %333 = vector.load %arg6[%c80_226, %c0_227] : memref<196x128xf32, #tpu.memory_space<vmem>>, vector<4x128xf32>
    tpu.vector_store %arg6[%c80_226, %c0_227], %332 {strides = array<i32>} : memref<196x128xf32, #tpu.memory_space<vmem>>, vector<4x128xf32>,
    %c0_228 = arith.constant 0 : index
    %c0_229 = arith.constant 0 : index
    %c0_230 = arith.constant 0 : index
    %c67 = arith.constant 67 : index
    %334 = vector.load %arg2[%c0_228, %c0_229, %c0_230, %c67] : memref<1x1x4x256xf32, #tpu.memory_space<vmem>>, vector<1x1x4x128xf32>
    %335 = vector.shape_cast %334 : vector<1x1x4x128xf32> to vector<4x128xf32>
    %cst_231 = arith.constant 0.000000e+00 : f32
    %336 = vector.shape_cast %312 : vector<1x128xi1> to vector<1x128xi1>
    %337 = vector.broadcast %336 : vector<1x128xi1> to vector<4x128xi1>
    %338 = vector.broadcast %cst_231 : f32 to vector<4x128xf32>
    %339 = arith.select %337, %335, %338 : vector<4x128xi1>, vector<4x128xf32>
    %c108 = arith.constant 108 : index
    %c0_232 = arith.constant 0 : index
    %340 = vector.load %arg6[%c108, %c0_232] : memref<196x128xf32, #tpu.memory_space<vmem>>, vector<4x128xf32>
    tpu.vector_store %arg6[%c108, %c0_232], %339 {strides = array<i32>} : memref<196x128xf32, #tpu.memory_space<vmem>>, vector<4x128xf32>,
    %c0_233 = arith.constant 0 : index
    %c0_234 = arith.constant 0 : index
    %c0_235 = arith.constant 0 : index
    %c83 = arith.constant 83 : index
    %341 = vector.load %arg2[%c0_233, %c0_234, %c0_235, %c83] : memref<1x1x4x256xf32, #tpu.memory_space<vmem>>, vector<1x1x4x128xf32>
    %342 = vector.shape_cast %341 : vector<1x1x4x128xf32> to vector<4x128xf32>
    %cst_236 = arith.constant 0.000000e+00 : f32
    %343 = vector.shape_cast %312 : vector<1x128xi1> to vector<1x128xi1>
    %344 = vector.broadcast %343 : vector<1x128xi1> to vector<4x128xi1>
    %345 = vector.broadcast %cst_236 : f32 to vector<4x128xf32>
    %346 = arith.select %344, %342, %345 : vector<4x128xi1>, vector<4x128xf32>
    %c136 = arith.constant 136 : index
    %c0_237 = arith.constant 0 : index
    %347 = vector.load %arg6[%c136, %c0_237] : memref<196x128xf32, #tpu.memory_space<vmem>>, vector<4x128xf32>
    tpu.vector_store %arg6[%c136, %c0_237], %346 {strides = array<i32>} : memref<196x128xf32, #tpu.memory_space<vmem>>, vector<4x128xf32>,
    %c0_238 = arith.constant 0 : index
    %c0_239 = arith.constant 0 : index
    %c0_240 = arith.constant 0 : index
    %c99 = arith.constant 99 : index
    %348 = vector.load %arg2[%c0_238, %c0_239, %c0_240, %c99] : memref<1x1x4x256xf32, #tpu.memory_space<vmem>>, vector<1x1x4x128xf32>
    %349 = vector.shape_cast %348 : vector<1x1x4x128xf32> to vector<4x128xf32>
    %cst_241 = arith.constant 0.000000e+00 : f32
    %350 = vector.shape_cast %312 : vector<1x128xi1> to vector<1x128xi1>
    %351 = vector.broadcast %350 : vector<1x128xi1> to vector<4x128xi1>
    %352 = vector.broadcast %cst_241 : f32 to vector<4x128xf32>
    %353 = arith.select %351, %349, %352 : vector<4x128xi1>, vector<4x128xf32>
    %c164 = arith.constant 164 : index
    %c0_242 = arith.constant 0 : index
    %354 = vector.load %arg6[%c164, %c0_242] : memref<196x128xf32, #tpu.memory_space<vmem>>, vector<4x128xf32>
    tpu.vector_store %arg6[%c164, %c0_242], %353 {strides = array<i32>} : memref<196x128xf32, #tpu.memory_space<vmem>>, vector<4x128xf32>,
    %c0_243 = arith.constant 0 : index
    %c0_244 = arith.constant 0 : index
    %c0_245 = arith.constant 0 : index
    %c115 = arith.constant 115 : index
    %355 = vector.load %arg2[%c0_243, %c0_244, %c0_245, %c115] : memref<1x1x4x256xf32, #tpu.memory_space<vmem>>, vector<1x1x4x128xf32>
    %356 = vector.shape_cast %355 : vector<1x1x4x128xf32> to vector<4x128xf32>
    %cst_246 = arith.constant 0.000000e+00 : f32
    %357 = vector.shape_cast %312 : vector<1x128xi1> to vector<1x128xi1>
    %358 = vector.broadcast %357 : vector<1x128xi1> to vector<4x128xi1>
    %359 = vector.broadcast %cst_246 : f32 to vector<4x128xf32>
    %360 = arith.select %358, %356, %359 : vector<4x128xi1>, vector<4x128xf32>
    %c192 = arith.constant 192 : index
    %c0_247 = arith.constant 0 : index
    %361 = vector.load %arg6[%c192, %c0_247] : memref<196x128xf32, #tpu.memory_space<vmem>>, vector<4x128xf32>
    tpu.vector_store %arg6[%c192, %c0_247], %360 {strides = array<i32>} : memref<196x128xf32, #tpu.memory_space<vmem>>, vector<4x128xf32>,
    %c0_248 = arith.constant 0 : index
    %c0_249 = arith.constant 0 : index
    %362 = vector.load %arg3[%c0_248, %c0_249] : memref<8x196xf32, #tpu.memory_space<vmem>>, vector<8x196xf32>
    %c0_250 = arith.constant 0 : index
    %c0_251 = arith.constant 0 : index
    %363 = vector.load %arg6[%c0_250, %c0_251] : memref<196x128xf32, #tpu.memory_space<vmem>>, vector<196x128xf32>
    %cst_252 = arith.constant dense<0.000000e+00> : vector<8x128xf32>
    %364 = tpu.matmul %362, %363, %cst_252 {dimension_numbers = #tpu.dot_dimension_numbers<[1], [0], [0], [1], [0, 0, 1, 1], [], []>} : vector<8x196xf32>, vector<196x128xf32>, vector<8x128xf32> -> vector<8x128xf32>
    %c0_253 = arith.constant 0 : index
    %c0_254 = arith.constant 0 : index
    %365 = vector.load %arg4[%c0_253, %c0_254] : memref<8x1xf32, #tpu.memory_space<vmem>>, vector<8x1xf32>
    %366 = vector.broadcast %365 : vector<8x1xf32> to vector<8x128xf32>
    %367 = arith.addf %364, %366 : vector<8x128xf32>
    %c0_255 = arith.constant 0 : index
    %c0_256 = arith.constant 0 : index
    %c0_257 = arith.constant 0 : index
    %368 = vector.load %arg5[%c0_255, %c0_256, %c0_257] : memref<1x8x128xf32, #tpu.memory_space<vmem>>, vector<1x8x128xf32>
    %369 = vector.shape_cast %368 : vector<1x8x128xf32> to vector<8x128xf32>
    %370 = vector.shape_cast %367 : vector<8x128xf32> to vector<1x8x128xf32>
    tpu.vector_store %arg5[%c0_255, %c0_256, %c0_257], %370 {strides = array<i32>} : memref<1x8x128xf32, #tpu.memory_space<vmem>>, vector<1x8x128xf32>,
    return
  }
  func.func @transform_0(%arg0: i32, %arg1: i32) -> (i32, i32, i32, i32) {
    %c0_i32 = arith.constant 0 : i32
    %c0_i32_0 = arith.constant 0 : i32
    %c0_i32_1 = arith.constant 0 : i32
    return %arg0, %arg1, %c0_i32, %c0_i32_0 : i32, i32, i32, i32
  }
  func.func @transform_1(%arg0: i32, %arg1: i32) -> (i32, i32) {
    %c0_i32 = arith.constant 0 : i32
    %c0_i32_0 = arith.constant 0 : i32
    %c0_i32_1 = arith.constant 0 : i32
    return %c0_i32, %c0_i32_0 : i32, i32
  }
  func.func @transform_2(%arg0: i32, %arg1: i32) -> (i32, i32) {
    %c0_i32 = arith.constant 0 : i32
    %c0_i32_0 = arith.constant 0 : i32
    %c0_i32_1 = arith.constant 0 : i32
    return %c0_i32, %c0_i32_0 : i32, i32
  }
  func.func @transform_3(%arg0: i32, %arg1: i32) -> (i32, i32, i32) {
    %c0_i32 = arith.constant 0 : i32
    %c0_i32_0 = arith.constant 0 : i32
    return %arg0, %c0_i32, %arg1 : i32, i32, i32
  }
}

</mosaic_0001>

<bundles_post_ra>
// kernel: tpu_custom_call.1
= control target key start
LH: loop header
LB: loop body
LE: loop exit
PB: predicated region body
PF: predicated region fallthrough
CT: control target
= control target key end

     0   :  { %s1876_s0 = inlined_call_operand.hbm [shape: f32[2,2,4,256], index: 0, kind: input, shape index: {}]   ;;  %s1877_s1 = inlined_call_operand.hbm [shape: f32[8,196], index: 1, kind: input, shape index: {}]   ;;  %s1878_s2 = inlined_call_operand.vmem [shape: f32[8,1], index: 2, kind: input, shape index: {}]   ;;  %s1879_s3 = inlined_call_operand.hbm [shape: f32[2,8,256], index: 3, kind: output, shape index: {}]  }
   0x1   :  { %1884 = sst [smem:[#allocation16_spill]] %s1877_s1 }
   0x2   :  { %8 = vsyncpa [#allocation4], 0 }
   0x3   :  { %10 = vsyncpa [#allocation4 + $0x1], 0 }
   0x4   :  { %11 = vsyncpa [#allocation7], 0 }
   0x5   :  { %12 = vsyncpa [#allocation5], 0 }
   0x6   :  { %14 = vsyncpa [#allocation5 + $0x1], 0  ;;  %s1459_s12 = smov 0   ;;  %s1461_s13 = smov 0  }
   0x7   :  { %s1463_s14 = smov 0   ;;  %s1465_s15 = smov 0  }
   0x8   :  { %s1467_s16 = smov 0   ;;  %s1469_s17 = smov 0  }
   0x9   :  { %s1471_s18 = smov 0   ;;  %s1473_s19 = smov 0  }
   0xa LB: > { %1885 = sst [smem:[#allocation12_spill]] %s1355_s12  ;;  %s1067_s20 = sadd.s32 4294967295, %s1383_s19   ;;  %s1383_s19 = sphi %s1473_s19, %s20_s19   ;;  %s1379_s18 = sphi %s1471_s18, %s1907_s18   ;;  %s1375_s17 = sphi %s1469_s17, %s1902_s17   ;;  %s1371_s16 = sphi %s1467_s16, %s1906_s16   ;;  %s1367_s15 = sphi %s1465_s15, %s1901_s15   ;;  %s1363_s14 = sphi %s1463_s14, %s1905_s14   ;;  %s1359_s13 = sphi %s1461_s13, %s1904_s13   ;;  %s1355_s12 = sphi %s1459_s12, %s1903_s12  }
   0xb   : > { %1886 = sst [smem:[#allocation13_spill]] %s1375_s17  ;;  %s1068_s21 = sadd.s32 4294967294, %s1383_s19  }
   0xc   : > { %p54_p0 = scmp.ne.s32.totalorder %s1359_s13, %s1355_s12  ;;  %p1503_p1 = scmp.eq.s32.totalorder %s1067_s20, 0 }
   0xd   : > { %p1507_p2 = scmp.eq.s32.totalorder %s1067_s20, 3  ;;  %p128_p3 = scmp.eq.s32.totalorder %s1068_s21, 3 }
   0xe   : > { %p1513_p4 = por %p1503_p1, %p54_p0  ;;  %p1069_p5 = scmp.ge.s32.totalorder %s1383_s19, 1 }
   0xf   : > { %p1518_p6 = por %p128_p3, %p54_p0  ;;  %p135_p7 = scmp.lt.s32.totalorder %s1383_s19, 5 }
  0x10   : > { %s1385_s27 = smov [#allocation6]   ;;  %s29_s29 = sadd.s32 1, %s1375_s17 }
  0x11   : > { %s1890_s25 = scalar_select %p1518_p6, 1, 0 }
  0x12   : > { %p1523_p8 = pnand %p1069_p5, %p135_p7  ;;  %s148_s28 = sshll.u32 %s1385_s27, 4  ;;  %s149_s28 = int_to_ptr.vmem [resolvable:$true] %s148_s28 }
  0x13   : > { %1891 = sst [smem:[#allocation14_spill]] %s1890_s25  ;;  %s1240_s30 = scalar_lea.vmem %s149_s28, 256 }
  0x14   : > { %p1095_p9 = pneg %p1523_p8  ;;  %p1241_p12 = scmp.ne.s32.totalorder %s149_s28, %s1240_s30 }
  0x15   : > { %p1248_p3 = scmp.lt.s32.totalorder %s149_s28, %s149_s28  ;;  %p1249_p6 = scmp.lt.s32.totalorder %s1240_s30, %s1240_s30 }
  0x16   : > { %p1096_p10 = pnand %p1095_p9, %p1503_p1 }
  0x17   : > { %p1250_p5 = por %p1249_p6, %p1248_p3 }
  0x18   : > { %p1231_p11 = pneg %p1096_p10 }
  0x1a   : > { %p1243_p13 = pnand %p1241_p12, %p1231_p11 }
  0x1c   : > { %p1244_p0 = pneg %p1243_p13 }
  0x1e   : > { %p1251_p7 = pnand %p1250_p5, %p1244_p0 }
  0x20   : > { %1254 = shalt.err (!%p1251_p7)
}
  0x21   : > { %s1893_s1 = sld [smem:[#allocation16_spill]]  ;;  %p30_p9 = scmp.ge.s32.totalorder %s29_s29, 2 }
  0x22   : > { %s32_s6 = sadd.s32 1, %s1379_s18  ;;  %s41_s7 = sadd.s32 1, %s1363_s14 }
  0x23   : > { %p48_p6 = scmp.ne.s32.totalorder %s1363_s14, %s1359_s13  ;;  %s1909_s29 = smov (%p30_p9, %s29_s29), 0 }
  0x24   : > { %1894 = sst [smem:[#allocation15_spill]] %s1909_s29  ;;  %s1911_s6 = smov (!%p30_p9, %s32_s6), %s1379_s18 }
  0x25   : > { %s37_s8 = ssub.s32 %s1375_s17, %s1909_s29  ;;  %p49_p11 = scmp.eq.s32.totalorder %s1383_s19, 0 }
  0x26   : > { %p34_p12 = scmp.ge.s32.totalorder %s1911_s6, 2  ;;  %p1547_p13 = por %p1507_p2, %p48_p6 }
  0x27   : > { %1098 = dma.hbm_to_vmem [thread:$0]  (!%p1096_p10), %s1893_s1, 256, %s149_s28, [#allocation7]  }
  0x28   : > { %p1551_p10 = por %p49_p11, %p48_p6  ;;  %p1108_p0 = scmp.lt.s32.totalorder %s1383_s19, 4 }
  0x29   : > { %s1913_s6 = smov (%p34_p12, %s1911_s6), 0  ;;  %s162_s11 = sand.u32 1, %s1363_s14  }
  0x2a   : > { %s1073_s20 = sshll.u32 %s1375_s17, 1  ;;  %s36_s21 = ssub.s32 %s1379_s18, %s1913_s6 }
  0x2b   : > { %s38_s27 = sor.u32 %s37_s8, %s36_s21  ;;  %s1072_s28 = sshll.u32 %s162_s11, 3 }
  0x2c   : > { %p39_p3 = scmp.eq.s32.totalorder %s38_s27, 0  ;;  %s1074_s23 = sshll.u32 %s1379_s18, 2 }
  0x2d   : > { %s166_s30 = scalar_lea.vmem [#allocation3], %s1072_s28  ;;  %s172_s1 = sadd.s32 %s1074_s23, %s1073_s20 }
  0x2e   : > { %s176_s4 = sshll.u32 %s166_s30, 4  ;;  %s1075_s29 = sshll.u32 %s172_s1, 6  ;;  %s177_s4 = int_to_ptr.vmem [resolvable:$true] %s176_s4 }
  0x2f   : > { %s1564_s5 = scalar_select %p39_p3, %s1363_s14, %s41_s7  }
  0x30   : > { %p1570_p2 = pnand %p1108_p0, %p1551_p10  ;;  %s174_s8 = scalar_lea.hbm %s1876_s0, %s1075_s29 }
  0x31   : > { %s163_s21 = scalar_lea.sflag [#allocation4], %s162_s11  ;;  %s1268_s27 = scalar_lea.vmem %s177_s4, 128 }
  0x32   : > { %p1257_p5 = pneg %p1570_p2  ;;  %p1269_p7 = scmp.ne.s32.totalorder %s177_s4, %s1268_s27 }
  0x33   : > { %s1386_s7 = smov [#allocation3]  }
  0x34   : > { %p1271_p9 = pnand %p1269_p7, %p1257_p5  ;;  %s1273_s1 = sshll.u32 %s1386_s7, 4  ;;  %s1274_s1 = int_to_ptr.vmem [resolvable:$false] %s1273_s1 }
  0x35   : > { %s1275_s10 = scalar_lea.vmem %s1274_s1, 256  ;;  %p1276_p11 = scmp.lt.s32.totalorder %s177_s4, %s1274_s1 }
  0x36   : > { %p1272_p6 = pneg %p1271_p9  ;;  %p1277_p12 = scmp.lt.s32.totalorder %s1275_s10, %s1268_s27 }
  0x38   : > { %p1278_p10 = por %p1277_p12, %p1276_p11 }
  0x3a   : > { %p1279_p0 = pnand %p1278_p10, %p1272_p6 }
  0x3c   : > { %1282 = shalt.err (!%p1279_p0)
}
  0x3d   : > { %1102 = dma.hbm_to_vmem [thread:$0]  (!%p1570_p2), %s174_s8, 128, %s177_s4, %s163_s21  }
  0x3e   : > { %185 = sbr.rel (%p1523_p8) target bundleno = 598 (0x256), region = 32  ;;  %s1584_s12 = sand.u32 (!%p1523_p8), 1, %s1359_s13  }
  0x3f   : > { %s1077_s17 = sshll.u32 (!%p1523_p8), %s1584_s12, 3  ;;  %s188_s29 = scalar_lea.sflag (!%p1523_p8), [#allocation4], %s1584_s12 }
  0x40   : > { %s191_s11 = scalar_lea.vmem (!%p1523_p8), [#allocation3], %s1077_s17 }
  0x43   : > { %1342 = dma.done.wait (%p1513_p4), %s188_s29, 128  }
  0x44   : > { %1344 = vsyncadd (%p1513_p4), %s188_s29, 4294967168 }
  0x45   : > { %1346 = dma.done.wait (%p1503_p1), [#allocation7], 256  }
  0x46   : > { %1348 = vsyncadd (%p1503_p1), [#allocation7], 4294967040  ;;  %v1598_v0 = vld [vmem:[%s191_s11] sm:$0xff]  ;;  %s1387_s25 = smov 48   ;;  %s1388_s26 = smov 49   ;;  %v1390_v2 = vmov 0.0   ;;  %v218_v3 = vlaneseq }
  0x47   : > { %546 = vrot.lane.b32.xlu1 %v1598_v0, %s1387_s25  ;;  %v1603_v1 = vcombine.high %v1598_v0, %v1598_v0  ;;  %466 = vrot.lane.b32.xlu0 %v1598_v0, %s1388_s26  ;;  %s1389_s24 = smov 51   ;;  %s1391_s22 = smov 50   ;;  %vm550_vm0 = vcmask 392192   ;;  %vm470_vm1 = vcmask 400384   ;;  %vm292_vm2 = vcmask 416768  }
  0x48   : > { %884 = vmatprep.subr.mxu0 %v1390_v2  ;;  %s1392_s20 = smov 62   ;;  %s1393_s28 = smov 61   ;;  %v219_v4 = vand.u32 127, %v218_v3  ;;  %vm381_vm5 = vcmask 408576   ;;  %vm713_vm7 = vcmask 506880   ;;  %vm802_vm9 = vcmask 498688  }
  0x49   : > { %s1394_s23 = smov 63   ;;  %s1395_s30 = smov 64   ;;  %vm624_vm11 = vcmask 515072   ;;  %vm539_vm13 = vcmask 523264   ;;  %vm369_vm14 = vcmask 539648   ;;  %vm458_vm15 = vcmask 531456  }
  0x4a   : > { %s1396_s4 = smov 66   ;;  %s1397_s8 = smov 65   ;;  %v1665_v7 = vand.u32 15, %v219_v4 }
  0x4b   : > { %548 = vrot.lane.b32.xlu1 %v1603_v1, %s1387_s25  ;;  %288 = vrot.lane.b32.xlu0 %v1598_v0, %s1389_s24  ;;  %s1398_s21 = smov 67   ;;  %s1399_s27 = smov 77  }
  0x4c   : > { %s1400_s7 = smov 79   ;;  %s1401_s1 = smov 78   ;;  %vm410_vm3 = vcmp.ge.s32.totalorder %v1665_v7, 1  ;;  %vm232_vm4 = vcmp.ge.s32.totalorder %v1665_v7, 3  ;;  %vm321_vm6 = vcmp.ge.s32.totalorder %v1665_v7, 2  ;;  %vm666_vm8 = vcmp.lt.s32.totalorder %v1665_v7, 14 }
  0x4d   : > { %s1402_s10 = smov 81   ;;  %s1403_s29 = smov 80   ;;  %vm755_vm10 = vcmp.lt.s32.totalorder %v1665_v7, 13  ;;  %vm577_vm12 = vcmp.lt.s32.totalorder %v1665_v7, 15 }
  0x4e   : > { %s1404_s11 = smov 83   ;;  %s1405_s25 = smov 82  }
  0x4f   : > { %468 = vrot.lane.b32.xlu0 %v1603_v1, %s1388_s26  ;;  %290 = vrot.lane.b32.xlu1 %v1603_v1, %s1389_s24  ;;  %s1406_s26 = smov 94   ;;  %s1407_s24 = smov 93  }
  0x53   : > { %377 = vrot.lane.b32.xlu0 %v1598_v0, %s1391_s22  ;;  %379 = vrot.lane.b32.xlu1 %v1603_v1, %s1391_s22  ;;  %s1408_s22 = smov 95  }
  0x57   : > { %709 = vrot.lane.b32.xlu0 %v1598_v0, %s1392_s20  ;;  %711 = vrot.lane.b32.xlu1 %v1603_v1, %s1392_s20  ;;  %s1409_s20 = smov 96  }
  0x5b   : > { %798 = vrot.lane.b32.xlu0 %v1598_v0, %s1393_s28  ;;  %800 = vrot.lane.b32.xlu1 %v1603_v1, %s1393_s28  ;;  %s1410_s28 = smov 98  }
  0x5f   : > { %620 = vrot.lane.b32.xlu0 %v1598_v0, %s1394_s23  ;;  %622 = vrot.lane.b32.xlu1 %v1603_v1, %s1394_s23  ;;  %s1411_s23 = smov 97  }
  0x63   : > { %535 = vrot.lane.b32.xlu0 %v1598_v0, %s1395_s30  ;;  %537 = vrot.lane.b32.xlu1 %v1603_v1, %s1395_s30  ;;  %s1412_s30 = smov 99  }
  0x67   : > { %365 = vrot.lane.b32.xlu0 %v1598_v0, %s1396_s4  ;;  %367 = vrot.lane.b32.xlu1 %v1603_v1, %s1396_s4  ;;  %s1413_s4 = smov 109  }
  0x6b   : > { %454 = vrot.lane.b32.xlu0 %v1598_v0, %s1397_s8  ;;  %456 = vrot.lane.b32.xlu1 %v1603_v1, %s1397_s8  ;;  %s1414_s8 = smov 111  }
  0x6f   : > { %276 = vrot.lane.b32.xlu0 %v1598_v0, %s1398_s21  ;;  %278 = vrot.lane.b32.xlu1 %v1603_v1, %s1398_s21  ;;  %s1415_s21 = smov 110  }
  0x73   : > { %786 = vrot.lane.b32.xlu0 %v1598_v0, %s1399_s27  ;;  %788 = vrot.lane.b32.xlu1 %v1603_v1, %s1399_s27  ;;  %s1416_s27 = smov 113  }
  0x77   : > { %608 = vrot.lane.b32.xlu0 %v1598_v0, %s1400_s7  ;;  %610 = vrot.lane.b32.xlu1 %v1603_v1, %s1400_s7  ;;  %s1417_s7 = smov 112  }
  0x7b   : > { %697 = vrot.lane.b32.xlu0 %v1598_v0, %s1401_s1  ;;  %699 = vrot.lane.b32.xlu1 %v1603_v1, %s1401_s1  ;;  %s1418_s1 = smov 115  }
  0x7f   : > { %442 = vrot.lane.b32.xlu0 %v1598_v0, %s1402_s10  ;;  %444 = vrot.lane.b32.xlu1 %v1603_v1, %s1402_s10  ;;  %s1419_s10 = smov 114  }
  0x83   : > { %524 = vrot.lane.b32.xlu0 %v1598_v0, %s1403_s29  ;;  %526 = vrot.lane.b32.xlu1 %v1603_v1, %s1403_s29  ;;  %s1420_s29 = smov 13  }
  0x87   : > { %264 = vrot.lane.b32.xlu0 %v1598_v0, %s1404_s11  ;;  %266 = vrot.lane.b32.xlu1 %v1603_v1, %s1404_s11  ;;  %s1421_s11 = smov 15  }
  0x8b   : > { %353 = vrot.lane.b32.xlu0 %v1598_v0, %s1405_s25  ;;  %355 = vrot.lane.b32.xlu1 %v1603_v1, %s1405_s25  ;;  %s1422_s25 = smov 14  }
  0x8f   : > { %685 = vrot.lane.b32.xlu0 %v1598_v0, %s1406_s26  ;;  %687 = vrot.lane.b32.xlu1 %v1603_v1, %s1406_s26  ;;  %s1423_s26 = smov 17  }
  0x93   : > { %774 = vrot.lane.b32.xlu0 %v1598_v0, %s1407_s24  ;;  %776 = vrot.lane.b32.xlu1 %v1603_v1, %s1407_s24  ;;  %s1424_s24 = smov 16  }
  0x97   : > { %596 = vrot.lane.b32.xlu0 %v1598_v0, %s1408_s22  ;;  %598 = vrot.lane.b32.xlu1 %v1603_v1, %s1408_s22  ;;  %s1425_s22 = smov 19  }
  0x9b   : > { %513 = vrot.lane.b32.xlu0 %v1598_v0, %s1409_s20  ;;  %515 = vrot.lane.b32.xlu1 %v1603_v1, %s1409_s20  ;;  %s1426_s20 = smov 18  }
  0x9f   : > { %341 = vrot.lane.b32.xlu0 %v1598_v0, %s1410_s28  ;;  %343 = vrot.lane.b32.xlu1 %v1603_v1, %s1410_s28  ;;  %s1427_s28 = smov 30  }
  0xa3   : > { %430 = vrot.lane.b32.xlu0 %v1598_v0, %s1411_s23  ;;  %432 = vrot.lane.b32.xlu1 %v1603_v1, %s1411_s23  ;;  %s1428_s23 = smov 29  }
  0xa7   : > { %252 = vrot.lane.b32.xlu0 %v1598_v0, %s1412_s30  ;;  %254 = vrot.lane.b32.xlu1 %v1603_v1, %s1412_s30  ;;  %s1429_s30 = smov 31  }
  0xab   : > { %762 = vrot.lane.b32.xlu0 %v1598_v0, %s1413_s4  ;;  %764 = vrot.lane.b32.xlu1 %v1603_v1, %s1413_s4  ;;  %s1430_s4 = smov 32  }
  0xaf   : > { %584 = vrot.lane.b32.xlu0 %v1598_v0, %s1414_s8  ;;  %586 = vrot.lane.b32.xlu1 %v1603_v1, %s1414_s8  ;;  %s1431_s8 = smov 34  }
  0xb3   : > { %673 = vrot.lane.b32.xlu0 %v1598_v0, %s1415_s21  ;;  %675 = vrot.lane.b32.xlu1 %v1603_v1, %s1415_s21  ;;  %s1432_s21 = smov 33  }
  0xb7   : > { %418 = vrot.lane.b32.xlu0 %v1598_v0, %s1416_s27  ;;  %420 = vrot.lane.b32.xlu1 %v1603_v1, %s1416_s27  ;;  %s1433_s27 = smov 35  }
  0xb9   : > { %v547_v5 = vpop.permute.xlu1 %546  ;;  %v467_v6 = vpop.permute.xlu0 %466 }
  0xbb   : > { %502 = vrot.lane.b32.xlu0 %v1598_v0, %s1417_s7  ;;  %504 = vrot.lane.b32.xlu1 %v1603_v1, %s1417_s7  ;;  %s1434_s7 = smov 45  }
  0xbd   : > { %v549_v8 = vpop.permute.xlu1 %548  ;;  %v289_v9 = vpop.permute.xlu0 %288 }
  0xbe   : > { %v551_v10 = vsel %vm550_vm0, %v547_v5, %v549_v8  ;;  %vm280_vm0 = vcmask 547840  }
  0xbf   : > { %553 = vst [vmem:[#allocation2 + $0x7c] sm:$0xf] %v551_v10  ;;  %240 = vrot.lane.b32.xlu0 %v1598_v0, %s1418_s1  ;;  %242 = vrot.lane.b32.xlu1 %v1603_v1, %s1418_s1  ;;  %s1435_s1 = smov 47  }
  0xc1   : > { %v469_v11 = vpop.permute.xlu0 %468  ;;  %v291_v12 = vpop.permute.xlu1 %290 }
  0xc2   : > { %v471_v13 = vsel %vm470_vm1, %v467_v6, %v469_v11  ;;  %v293_v14 = vsel %vm292_vm2, %v289_v9, %v291_v12  ;;  %vm790_vm1 = vcmask 629760   ;;  %vm612_vm2 = vcmask 646144  }
  0xc3   : > { %v473_v15 = vsel %vm410_vm3, %v471_v13, 0.0  ;;  %v295_v16 = vsel %vm232_vm4, %v293_v14, 0.0  ;;  %329 = vrot.lane.b32.xlu0 %v1598_v0, %s1419_s10  ;;  %331 = vrot.lane.b32.xlu1 %v1603_v1, %s1419_s10  ;;  %s1436_s10 = smov 46  }
  0xc4   : > { %474 = vst [vmem:[#allocation2 + $0x78] sm:$0xf] %v473_v15  ;;  %296 = vst [vmem:[#allocation2 + $0x70] sm:$0xf] %v295_v16 }
  0xc5   : > { %v378_v17 = vpop.permute.xlu0 %377  ;;  %v380_v18 = vpop.permute.xlu1 %379 }
  0xc6   : > { %v382_v19 = vsel %vm381_vm5, %v378_v17, %v380_v18  ;;  %vm701_vm5 = vcmask 637952  }
  0xc7   : > { %v384_v20 = vsel %vm321_vm6, %v382_v19, 0.0  ;;  %834 = vrot.lane.b32.xlu0 %v1598_v0, %s1420_s29  ;;  %836 = vrot.lane.b32.xlu1 %v1603_v1, %s1420_s29 }
  0xc8   : > { %385 = vst [vmem:[#allocation2 + $0x74] sm:$0xf] %v384_v20 }
  0xc9   : > { %v710_v21 = vpop.permute.xlu0 %709  ;;  %v712_v22 = vpop.permute.xlu1 %711 }
  0xca   : > { %v714_v23 = vsel %vm713_vm7, %v710_v21, %v712_v22  ;;  %vm446_vm7 = vcmask 662528  }
  0xcb   : > { %v716_v24 = vsel %vm666_vm8, %v714_v23, 0.0  ;;  %656 = vrot.lane.b32.xlu0 %v1598_v0, %s1421_s11  ;;  %658 = vrot.lane.b32.xlu1 %v1603_v1, %s1421_s11  ;;  %v860_v25 = vld [vmem:[#allocation2 + $0x78] sm:$0xff] }
  0xcc   : > { %717 = vst [vmem:[#allocation2 + $0x68] sm:$0xf] %v716_v24  ;;  %885 = vmatpush1.msra.mxu0 %v860_v25 }
  0xcd   : > { %v799_v26 = vpop.permute.xlu0 %798  ;;  %v801_v27 = vpop.permute.xlu1 %800  ;;  %886 = vmatprep.subr.mxu0 %v1390_v2 }
  0xce   : > { %v803_v28 = vsel %vm802_vm9, %v799_v26, %v801_v27  ;;  %vm528_vm9 = vcmask 654336   ;;  %v844_v27 = vld [vmem:[#allocation6 + $0x8] sm:$0xff] }
  0xcf   : > { %v805_v29 = vsel %vm755_vm10, %v803_v28, 0.0  ;;  %745 = vrot.lane.b32.xlu0 %v1598_v0, %s1422_s25  ;;  %747 = vrot.lane.b32.xlu1 %v1603_v1, %s1422_s25  ;;  %v859_v30 = vld [vmem:[#allocation2 + $0x70] sm:$0xff]  ;;  %s1083_s25 = sshll.u32 %s1371_s16, 1 }
  0xd0   : > { %806 = vst [vmem:[#allocation2 + $0x6c] sm:$0xf] %v805_v29  ;;  %887 = vmatpush1.msra.mxu0 %v859_v30 }
  0xd1   : > { %v621_v31 = vpop.permute.xlu0 %620  ;;  %v623_v32 = vpop.permute.xlu1 %622  ;;  %888 = vmatprep.subr.mxu0 %v1390_v2 }
  0xd2   : > { %v625_v33 = vsel %vm624_vm11, %v621_v31, %v623_v32  ;;  %vm268_vm11 = vcmask 678912  }
  0xd3   : > { %v627_v34 = vsel %vm577_vm12, %v625_v33, 0.0  ;;  %490 = vrot.lane.b32.xlu0 %v1598_v0, %s1423_s26  ;;  %492 = vrot.lane.b32.xlu1 %v1603_v1, %s1423_s26  ;;  %v870_v33 = vld [vmem:[%s1878_s2] sm:$0xff]  ;;  %s967_s26 = sadd.s32 %s1367_s15, %s1083_s25  ;;  %s1438_s15 = smov [#allocation8]  }
  0xd4   : > { %628 = vst [vmem:[#allocation2 + $0x64] sm:$0xf] %v627_v34  ;;  %s1287_s16 = sshll.u32 %s1438_s15, 4  ;;  %s1288_s16 = int_to_ptr.vmem [resolvable:$false] %s1287_s16 }
  0xd5   : > { %v536_v35 = vpop.permute.xlu0 %535  ;;  %v538_v36 = vpop.permute.xlu1 %537 }
  0xd6   : > { %v540_v37 = vsel %vm539_vm13, %v536_v35, %v538_v36  ;;  %vm357_vm13 = vcmask 670720   ;;  %v1437_v36 = vmov 0  }
  0xd7   : > { %542 = vst [vmem:[#allocation2 + $0x60] sm:$0xf] %v540_v37  ;;  %568 = vrot.lane.b32.xlu0 %v1598_v0, %s1424_s24  ;;  %570 = vrot.lane.b32.xlu1 %v1603_v1, %s1424_s24  ;;  %v858_v38 = vld [vmem:[#allocation2 + $0x68] sm:$0xff]  ;;  %s1084_s24 = sshll.u32 %s967_s26, 7 }
  0xd8   : > { %889 = vmatpush1.msra.mxu0 %v858_v38  ;;  %1227 = vset.pattern.permute.xlu0 %v1437_v36 }
  0xd9   : > { %v366_v39 = vpop.permute.xlu0 %365  ;;  %v368_v40 = vpop.permute.xlu1 %367  ;;  %890 = vmatprep.subr.mxu0 %v1390_v2 }
  0xda   : > { %v370_v41 = vsel %vm369_vm14, %v366_v39, %v368_v40  ;;  %vm689_vm14 = vcmask 769024  }
  0xdb   : > { %v372_v42 = vsel %vm321_vm6, %v370_v41, 0.0  ;;  %312 = vrot.lane.b32.xlu0 %v1598_v0, %s1425_s22  ;;  %314 = vrot.lane.b32.xlu1 %v1603_v1, %s1425_s22  ;;  %s217_s22 = scalar_lea.vmem [#allocation8], %s1077_s17  ;;  %s1289_s17 = scalar_lea.vmem %s1288_s16, 256 }
  0xdc   : > { %373 = vst [vmem:[#allocation2 + $0x58] sm:$0xf] %v372_v42 }
  0xdd   : > { %v455_v43 = vpop.permute.xlu0 %454  ;;  %v457_v44 = vpop.permute.xlu1 %456 }
  0xde   : > { %v459_v45 = vsel %vm458_vm15, %v455_v43, %v457_v44  ;;  %v857_v46 = vld [vmem:[#allocation2 + $0x60] sm:$0xff]  ;;  %vm778_vm15 = vcmask 760832  }
  0xdf   : > { %v461_v47 = vsel %vm410_vm3, %v459_v45, 0.0  ;;  %891 = vmatpush1.msra.mxu0 %v857_v46  ;;  %401 = vrot.lane.b32.xlu0 %v1598_v0, %s1426_s20 }
  0xe0   : > { %462 = vst [vmem:[#allocation2 + $0x5c] sm:$0xf] %v461_v47  ;;  %403 = vrot.lane.b32.xlu1 %v1603_v1, %s1426_s20  ;;  %892 = vmatprep.subr.mxu0 %v1390_v2  ;;  %s971_s20 = sshll.u32 %s217_s22, 4  ;;  %s972_s20 = int_to_ptr.vmem [resolvable:$true] %s971_s20 }
  0xe1   : > { %v277_v48 = vpop.permute.xlu0 %276  ;;  %v279_v49 = vpop.permute.xlu1 %278  ;;  %p1290_p3 = scmp.lt.s32.totalorder %s972_s20, %s1288_s16 }
  0xe2   : > { %v281_v50 = vsel %vm280_vm0, %v277_v48, %v279_v49  ;;  %vm876_vm0 = vcmask 556032  }
  0xe3   : > { %v283_v51 = vsel %vm232_vm4, %v281_v50, 0.0  ;;  %733 = vrot.lane.b32.xlu0 %v1598_v0, %s1427_s28  ;;  %1081 = vmatprep.mubr.msk.f32.mxu0 %vm876_vm0, %v844_v27  ;;  %vm506_vm0 = vcmask 916480  }
  0xe4   : > { %284 = vst [vmem:[#allocation2 + $0x54] sm:$0xf] %v283_v51  ;;  %735 = vrot.lane.b32.xlu1 %v1603_v1, %s1427_s28 }
  0xe5   : > { %v787_v52 = vpop.permute.xlu0 %786  ;;  %v789_v53 = vpop.permute.xlu1 %788 }
  0xe6   : > { %v791_v54 = vsel %vm790_vm1, %v787_v52, %v789_v53  ;;  %vm600_vm1 = vcmask 777216  }
  0xe7   : > { %v793_v55 = vsel %vm755_vm10, %v791_v54, 0.0  ;;  %822 = vrot.lane.b32.xlu0 %v1598_v0, %s1428_s23  ;;  %v856_v56 = vld [vmem:[#allocation2 + $0x58] sm:$0xff] }
  0xe8   : > { %794 = vst [vmem:[#allocation2 + $0x50] sm:$0xf] %v793_v55  ;;  %824 = vrot.lane.b32.xlu1 %v1603_v1, %s1428_s23  ;;  %893 = vmatpush1.msra.mxu0 %v856_v56 }
  0xe9   : > { %v609_v57 = vpop.permute.xlu0 %608  ;;  %v611_v58 = vpop.permute.xlu1 %610  ;;  %894 = vmatprep.subr.mxu0 %v1390_v2 }
  0xea   : > { %v613_v59 = vsel %vm612_vm2, %v609_v57, %v611_v58  ;;  %vm517_vm2 = vcmask 785408  }
  0xeb   : > { %v615_v60 = vsel %vm577_vm12, %v613_v59, 0.0  ;;  %644 = vrot.lane.b32.xlu0 %v1598_v0, %s1429_s30 }
  0xec   : > { %616 = vst [vmem:[#allocation2 + $0x48] sm:$0xf] %v615_v60  ;;  %646 = vrot.lane.b32.xlu1 %v1603_v1, %s1429_s30  ;;  %s1829_s30 = scalar_lea.hbm %s1879_s3, %s1084_s24 }
  0xed   : > { %v698_v61 = vpop.permute.xlu0 %697  ;;  %v700_v62 = vpop.permute.xlu1 %699 }
  0xee   : > { %v702_v63 = vsel %vm701_vm5, %v698_v61, %v700_v62  ;;  %vm345_vm5 = vcmask 801792  }
  0xef   : > { %v704_v3 = vsel %vm666_vm8, %v702_v63, 0.0  ;;  %557 = vrot.lane.b32.xlu0 %v1598_v0, %s1430_s4  ;;  %v855_v4 = vld [vmem:[#allocation2 + $0x50] sm:$0xff] }
  0xf0   : > { %705 = vst [vmem:[#allocation2 + $0x4c] sm:$0xf] %v704_v3  ;;  %559 = vrot.lane.b32.xlu1 %v1603_v1, %s1430_s4  ;;  %895 = vmatpush1.msra.mxu0 %v855_v4  ;;  %s956_s4 = scalar_lea.sflag [#allocation5], %s1584_s12 }
  0xf1   : > { %v443_v5 = vpop.permute.xlu0 %442  ;;  %v445_v6 = vpop.permute.xlu1 %444  ;;  %896 = vmatprep.subr.mxu0 %v1390_v2 }
  0xf2   : > { %v447_v8 = vsel %vm446_vm7, %v443_v5, %v445_v6  ;;  %vm434_vm7 = vcmask 793600  }
  0xf3   : > { %v449_v9 = vsel %vm410_vm3, %v447_v8, 0.0  ;;  %389 = vrot.lane.b32.xlu0 %v1598_v0, %s1431_s8 }
  0xf4   : > { %450 = vst [vmem:[#allocation2 + $0x40] sm:$0xf] %v449_v9  ;;  %391 = vrot.lane.b32.xlu1 %v1603_v1, %s1431_s8  ;;  %s1283_s8 = scalar_lea.vmem %s972_s20, 128 }
  0xf5   : > { %v525_v10 = vpop.permute.xlu0 %524  ;;  %v527_v11 = vpop.permute.xlu1 %526  ;;  %p1284_p1 = scmp.ne.s32.totalorder %s972_s20, %s1283_s8  ;;  %p1291_p2 = scmp.lt.s32.totalorder %s1289_s17, %s1283_s8 }
  0xf6   : > { %v529_v12 = vsel %vm528_vm9, %v525_v10, %v527_v11  ;;  %vm256_vm9 = vcmask 809984  }
  0xf7   : > { %531 = vst [vmem:[#allocation2 + $0x44] sm:$0xf] %v529_v12  ;;  %478 = vrot.lane.b32.xlu0 %v1598_v0, %s1432_s21  ;;  %v854_v13 = vld [vmem:[#allocation2 + $0x48] sm:$0xff]  ;;  %p1285_p4 = pnand %p1284_p1, %p1547_p13  ;;  %p1292_p5 = por %p1291_p2, %p1290_p3 }
  0xf8   : > { %480 = vrot.lane.b32.xlu1 %v1603_v1, %s1432_s21  ;;  %897 = vmatpush1.msra.mxu0 %v854_v13 }
  0xf9   : > { %v265_v14 = vpop.permute.xlu0 %264  ;;  %v267_v15 = vpop.permute.xlu1 %266  ;;  %898 = vmatprep.subr.mxu0 %v1390_v2  ;;  %p1286_p8 = pneg %p1285_p4 }
  0xfa   : > { %v269_v16 = vsel %vm268_vm11, %v265_v14, %v267_v15  ;;  %vm766_vm11 = vcmask 891904  }
  0xfb   : > { %v271_v17 = vsel %vm232_vm4, %v269_v16, 0.0  ;;  %300 = vrot.lane.b32.xlu0 %v1598_v0, %s1433_s27  ;;  %p1293_p7 = pnand %p1292_p5, %p1286_p8 }
  0xfc   : > { %272 = vst [vmem:[#allocation2 + $0x38] sm:$0xf] %v271_v17  ;;  %302 = vrot.lane.b32.xlu1 %v1603_v1, %s1433_s27 }
  0xfd   : > { %v354_v18 = vpop.permute.xlu0 %353  ;;  %v356_v19 = vpop.permute.xlu1 %355 }
  0xfe   : > { %v358_v20 = vsel %vm357_vm13, %v354_v18, %v356_v19  ;;  %v853_v21 = vld [vmem:[#allocation2 + $0x40] sm:$0xff]  ;;  %vm588_vm13 = vcmask 908288  }
  0xff   : > { %v360_v22 = vsel %vm321_vm6, %v358_v20, 0.0  ;;  %899 = vmatpush1.msra.mxu0 %v853_v21  ;;  %810 = vrot.lane.b32.xlu0 %v1598_v0, %s1434_s7 }
 0x100   : > { %361 = vst [vmem:[#allocation2 + $0x3c] sm:$0xf] %v360_v22  ;;  %812 = vrot.lane.b32.xlu1 %v1603_v1, %s1434_s7  ;;  %900 = vmatprep.subr.mxu0 %v1390_v2 }
 0x101   : > { %v686_v23 = vpop.permute.xlu0 %685  ;;  %v688_v24 = vpop.permute.xlu1 %687 }
 0x102   : > { %v690_v25 = vsel %vm689_vm14, %v686_v23, %v688_v24  ;;  %vm677_vm14 = vcmask 900096  }
 0x103   : > { %v692_v26 = vsel %vm666_vm8, %v690_v25, 0.0  ;;  %632 = vrot.lane.b32.xlu0 %v1598_v0, %s1435_s1 }
 0x104   : > { %693 = vst [vmem:[#allocation2 + $0x30] sm:$0xf] %v692_v26  ;;  %634 = vrot.lane.b32.xlu1 %v1603_v1, %s1435_s1 }
 0x105   : > { %v775_v28 = vpop.permute.xlu0 %774  ;;  %v777_v29 = vpop.permute.xlu1 %776 }
 0x106   : > { %v779_v30 = vsel %vm778_vm15, %v775_v28, %v777_v29  ;;  %vm422_vm15 = vcmask 924672  }
 0x107   : > { %v781_v31 = vsel %vm755_vm10, %v779_v30, 0.0  ;;  %721 = vrot.lane.b32.xlu0 %v1598_v0, %s1436_s10  ;;  %v852_v32 = vld [vmem:[#allocation2 + $0x38] sm:$0xff] }
 0x108   : > { %782 = vst [vmem:[#allocation2 + $0x34] sm:$0xf] %v781_v31  ;;  %723 = vrot.lane.b32.xlu1 %v1603_v1, %s1436_s10  ;;  %901 = vmatpush1.msra.mxu0 %v852_v32 }
 0x109   : > { %v597_v34 = vpop.permute.xlu0 %596  ;;  %v599_v35 = vpop.permute.xlu1 %598  ;;  %902 = vmatprep.subr.mxu0 %v1390_v2 }
 0x10a   : > { %v601_v37 = vsel %vm600_vm1, %v597_v34, %v599_v35  ;;  %vm244_vm1 = vcmask 941056  }
 0x10b   : > { %v603_v0 = vsel %vm577_vm12, %v601_v37, 0.0  ;;  %873 = vperm.xlu0 %1227, %v870_v33  }
 0x10c   : > { %604 = vst [vmem:[#allocation2 + $0x2c] sm:$0xf] %v603_v0 }
 0x10d   : > { %v514_v38 = vpop.permute.xlu0 %513  ;;  %v516_v1 = vpop.permute.xlu1 %515 }
 0x10e   : > { %v518_v39 = vsel %vm517_vm2, %v514_v38, %v516_v1  ;;  %vm333_vm2 = vcmask 932864  }
 0x10f   : > { %520 = vst [vmem:[#allocation2 + $0x28] sm:$0xf] %v518_v39  ;;  %v851_v40 = vld [vmem:[#allocation2 + $0x30] sm:$0xff] }
 0x110   : > { %903 = vmatpush1.msra.mxu0 %v851_v40 }
 0x111   : > { %v342_v41 = vpop.permute.xlu0 %341  ;;  %v344_v42 = vpop.permute.xlu1 %343  ;;  %904 = vmatprep.subr.mxu0 %v1390_v2 }
 0x112   : > { %v346_v43 = vsel %vm345_vm5, %v342_v41, %v344_v42  ;;  %vm838_vm5 = vcmask 105472  }
 0x113   : > { %v348_v44 = vsel %vm321_vm6, %v346_v43, 0.0 }
 0x114   : > { %349 = vst [vmem:[#allocation2 + $0x20] sm:$0xf] %v348_v44 }
 0x115   : > { %v431_v45 = vpop.permute.xlu0 %430  ;;  %v433_v46 = vpop.permute.xlu1 %432 }
 0x116   : > { %v435_v47 = vsel %vm434_vm7, %v431_v45, %v433_v46  ;;  %v850_v48 = vld [vmem:[#allocation2 + $0x28] sm:$0xff]  ;;  %vm660_vm7 = vcmask 121856  }
 0x117   : > { %v437_v49 = vsel %vm410_vm3, %v435_v47, 0.0  ;;  %905 = vmatpush1.msra.mxu0 %v850_v48 }
 0x118   : > { %438 = vst [vmem:[#allocation2 + $0x24] sm:$0xf] %v437_v49  ;;  %906 = vmatprep.subr.mxu0 %v1390_v2 }
 0x119   : > { %v253_v50 = vpop.permute.xlu0 %252  ;;  %v255_v51 = vpop.permute.xlu1 %254 }
 0x11a   : > { %v257_v52 = vsel %vm256_vm9, %v253_v50, %v255_v51  ;;  %vm749_vm9 = vcmask 113664  }
 0x11b   : > { %v259_v53 = vsel %vm232_vm4, %v257_v52, 0.0 }
 0x11c   : > { %260 = vst [vmem:[#allocation2 + $0x1c] sm:$0xf] %v259_v53 }
 0x11d   : > { %v763_v54 = vpop.permute.xlu0 %762  ;;  %v765_v55 = vpop.permute.xlu1 %764 }
 0x11e   : > { %v767_v56 = vsel %vm766_vm11, %v763_v54, %v765_v55  ;;  %vm880_vm11 = vcmask 1043456  }
 0x11f   : > { %v769_v57 = vsel %vm755_vm10, %v767_v56, 0.0  ;;  %v849_v58 = vld [vmem:[#allocation2 + $0x20] sm:$0xff] }
 0x120   : > { %770 = vst [vmem:[#allocation2 + $0x18] sm:$0xf] %v769_v57  ;;  %907 = vmatpush1.msra.mxu0 %v849_v58 }
 0x121   : > { %v585_v59 = vpop.permute.xlu0 %584  ;;  %v587_v60 = vpop.permute.xlu1 %586  ;;  %908 = vmatprep.subr.mxu0 %v1390_v2 }
 0x122   : > { %v589_v61 = vsel %vm588_vm13, %v585_v59, %v587_v60  ;;  %vm494_vm13 = vcmask 138240  }
 0x123   : > { %v591_v62 = vsel %vm577_vm12, %v589_v61, 0.0 }
 0x124   : > { %592 = vst [vmem:[#allocation2 + $0x10] sm:$0xf] %v591_v62 }
 0x125   : > { %v674_v63 = vpop.permute.xlu0 %673  ;;  %v676_v3 = vpop.permute.xlu1 %675 }
 0x126   : > { %v678_v4 = vsel %vm677_vm14, %v674_v63, %v676_v3  ;;  %vm572_vm14 = vcmask 130048  }
 0x127   : > { %v680_v5 = vsel %vm666_vm8, %v678_v4, 0.0  ;;  %v848_v6 = vld [vmem:[#allocation2 + $0x18] sm:$0xff] }
 0x128   : > { %681 = vst [vmem:[#allocation2 + $0x14] sm:$0xf] %v680_v5  ;;  %909 = vmatpush1.msra.mxu0 %v848_v6 }
 0x129   : > { %v419_v8 = vpop.permute.xlu0 %418  ;;  %v421_v9 = vpop.permute.xlu1 %420  ;;  %910 = vmatprep.subr.mxu0 %v1390_v2 }
 0x12a   : > { %v423_v10 = vsel %vm422_vm15, %v419_v8, %v421_v9  ;;  %vm316_vm15 = vcmask 154624  }
 0x12b   : > { %v425_v11 = vsel %vm410_vm3, %v423_v10, 0.0 }
 0x12c   : > { %426 = vst [vmem:[#allocation2 + $0x8] sm:$0xf] %v425_v11 }
 0x12d   : > { %v503_v12 = vpop.permute.xlu0 %502  ;;  %v505_v13 = vpop.permute.xlu1 %504 }
 0x12e   : > { %v507_v14 = vsel %vm506_vm0, %v503_v12, %v505_v13  ;;  %vm405_vm0 = vcmask 146432  }
 0x12f   : > { %509 = vst [vmem:[#allocation2 + $0xc] sm:$0xf] %v507_v14  ;;  %v847_v15 = vld [vmem:[#allocation2 + $0x10] sm:$0xff] }
 0x130   : > { %911 = vmatpush1.msra.mxu0 %v847_v15 }
 0x131   : > { %v241_v16 = vpop.permute.xlu0 %240  ;;  %v243_v17 = vpop.permute.xlu1 %242  ;;  %912 = vmatprep.subr.mxu0 %v1390_v2 }
 0x132   : > { %v245_v18 = vsel %vm244_vm1, %v241_v16, %v243_v17  ;;  %vm737_vm1 = vcmask 244736  }
 0x133   : > { %v247_v19 = vsel %vm232_vm4, %v245_v18, 0.0 }
 0x134   : > { %248 = vst [vmem:[#allocation2] sm:$0xf] %v247_v19 }
 0x135   : > { %v330_v20 = vpop.permute.xlu0 %329  ;;  %v332_v21 = vpop.permute.xlu1 %331 }
 0x136   : > { %v334_v22 = vsel %vm333_vm2, %v330_v20, %v332_v21  ;;  %v846_v23 = vld [vmem:[#allocation2 + $0x8] sm:$0xff]  ;;  %vm826_vm2 = vcmask 236544  }
 0x137   : > { %v336_v24 = vsel %vm321_vm6, %v334_v22, 0.0  ;;  %913 = vmatpush1.msra.mxu0 %v846_v23 }
 0x138   : > { %337 = vst [vmem:[#allocation2 + $0x4] sm:$0xf] %v336_v24  ;;  %914 = vmatprep.subr.mxu0 %v1390_v2 }
 0x139   : > { %v835_v25 = vpop.permute.xlu0 %834  ;;  %v837_v26 = vpop.permute.xlu1 %836 }
 0x13a   : > { %v839_v27 = vsel %vm838_vm5, %v835_v25, %v837_v26  ;;  %vm648_vm5 = vcmask 252928  }
 0x13b   : > { %v841_v28 = vsel %vm755_vm10, %v839_v27, 0.0 }
 0x13c   : > { %842 = vst [vmem:[#allocation2 + $0xc0] sm:$0xf] %v841_v28 }
 0x13d   : > { %v657_v29 = vpop.permute.xlu0 %656  ;;  %v659_v30 = vpop.permute.xlu1 %658 }
 0x13e   : > { %v661_v31 = vsel %vm660_vm7, %v657_v29, %v659_v30  ;;  %vm561_vm7 = vcmask 261120  }
 0x13f   : > { %v663_v32 = vsel %vm577_vm12, %v661_v31, 0.0  ;;  %v845_v33 = vld [vmem:[#allocation2] sm:$0xff] }
 0x140   : > { %664 = vst [vmem:[#allocation2 + $0xb8] sm:$0xf] %v663_v32  ;;  %915 = vmatpush1.msra.mxu0 %v845_v33 }
 0x141   : > { %v746_v34 = vpop.permute.xlu0 %745  ;;  %v748_v35 = vpop.permute.xlu1 %747  ;;  %930 = vmatprep.subr.mxu0 %v1390_v2 }
 0x142   : > { %v750_v36 = vsel %vm749_vm9, %v746_v34, %v748_v35  ;;  %vm393_vm9 = vcmask 277504  }
 0x143   : > { %v752_v37 = vsel %vm666_vm8, %v750_v36, 0.0  ;;  %v869_v0 = vld [vmem:[#allocation2 + $0xc0] sm:$0xf] }
 0x144   : > { %753 = vst [vmem:[#allocation2 + $0xbc] sm:$0xf] %v752_v37  ;;  %1080 = vmatpush2.msk.msra.mxu0 %vm880_vm11, %v869_v0  ;;  %vm482_vm11 = vcmask 269312   ;;  %v843_v0 = vld [vmem:[#allocation6] sm:$0xff] }
 0x145   : > { %v491_v38 = vpop.permute.xlu0 %490  ;;  %v493_v1 = vpop.permute.xlu1 %492  ;;  %932 = vmatprep.subr.mxu0 %v1390_v2 }
 0x146   : > { %v495_v39 = vsel %vm494_vm13, %v491_v38, %v493_v1  ;;  %vm304_vm13 = vcmask 285696  }
 0x147   : > { %v497_v40 = vsel %vm410_vm3, %v495_v39, 0.0 }
 0x148   : > { %498 = vst [vmem:[#allocation2 + $0xb0] sm:$0xf] %v497_v40 }
 0x149   : > { %v569_v41 = vpop.permute.xlu0 %568  ;;  %v571_v42 = vpop.permute.xlu1 %570 }
 0x14a   : > { %v573_v43 = vsel %vm572_vm14, %v569_v41, %v571_v42 }
 0x14b   : > { %575 = vst [vmem:[#allocation2 + $0xb4] sm:$0xf] %v573_v43  ;;  %v868_v44 = vld [vmem:[#allocation2 + $0xb8] sm:$0xff] }
 0x14c   : > { %933 = vmatpush2.msra.mxu0 %v868_v44 }
 0x14d   : > { %v313_v45 = vpop.permute.xlu0 %312  ;;  %v315_v46 = vpop.permute.xlu1 %314  ;;  %934 = vmatprep.subr.mxu0 %v1390_v2 }
 0x14e   : > { %v317_v47 = vsel %vm316_vm15, %v313_v45, %v315_v46 }
 0x14f   : > { %v319_v48 = vsel %vm232_vm4, %v317_v47, 0.0 }
 0x150   : > { %320 = vst [vmem:[#allocation2 + $0xa8] sm:$0xf] %v319_v48 }
 0x151   : > { %v402_v49 = vpop.permute.xlu0 %401 }
 0x152   : > { %v404_v50 = vpop.permute.xlu1 %403  ;;  %v867_v51 = vld [vmem:[#allocation2 + $0xb0] sm:$0xff] }
 0x153   : > { %v406_v52 = vsel %vm405_vm0, %v402_v49, %v404_v50  ;;  %935 = vmatpush2.msra.mxu0 %v867_v51 }
 0x154   : > { %v408_v53 = vsel %vm321_vm6, %v406_v52, 0.0  ;;  %936 = vmatprep.subr.mxu0 %v1390_v2 }
 0x155   : > { %409 = vst [vmem:[#allocation2 + $0xac] sm:$0xf] %v408_v53  ;;  %v734_v54 = vpop.permute.xlu0 %733 }
 0x156   : > { %v736_v55 = vpop.permute.xlu1 %735 }
 0x157   : > { %v738_v56 = vsel %vm737_vm1, %v734_v54, %v736_v55 }
 0x158   : > { %v740_v57 = vsel %vm666_vm8, %v738_v56, 0.0 }
 0x159   : > { %741 = vst [vmem:[#allocation2 + $0xa0] sm:$0xf] %v740_v57  ;;  %v823_v58 = vpop.permute.xlu0 %822 }
 0x15a   : > { %v825_v59 = vpop.permute.xlu1 %824 }
 0x15b   : > { %v827_v60 = vsel %vm826_vm2, %v823_v58, %v825_v59 }
 0x15c   : > { %v829_v61 = vsel %vm755_vm10, %v827_v60, 0.0  ;;  %v866_v62 = vld [vmem:[#allocation2 + $0xa8] sm:$0xff] }
 0x15d   : > { %830 = vst [vmem:[#allocation2 + $0xa4] sm:$0xf] %v829_v61  ;;  %937 = vmatpush2.msra.mxu0 %v866_v62  ;;  %v645_v63 = vpop.permute.xlu0 %644 }
 0x15e   : > { %v647_v3 = vpop.permute.xlu1 %646  ;;  %938 = vmatprep.subr.mxu0 %v1390_v2 }
 0x15f   : > { %v649_v4 = vsel %vm648_vm5, %v645_v63, %v647_v3 }
 0x160   : > { %v651_v5 = vsel %vm577_vm12, %v649_v4, 0.0 }
 0x161   : > { %652 = vst [vmem:[#allocation2 + $0x9c] sm:$0xf] %v651_v5  ;;  %v558_v6 = vpop.permute.xlu0 %557 }
 0x162   : > { %v560_v8 = vpop.permute.xlu1 %559 }
 0x163   : > { %v562_v9 = vsel %vm561_vm7, %v558_v6, %v560_v8 }
 0x164   : > { %564 = vst [vmem:[#allocation2 + $0x98] sm:$0xf] %v562_v9  ;;  %v865_v10 = vld [vmem:[#allocation2 + $0xa0] sm:$0xff] }
 0x165   : > { %939 = vmatpush2.msra.mxu0 %v865_v10  ;;  %v390_v11 = vpop.permute.xlu0 %389 }
 0x166   : > { %v392_v12 = vpop.permute.xlu1 %391  ;;  %940 = vmatprep.subr.mxu0 %v1390_v2 }
 0x167   : > { %v394_v13 = vsel %vm393_vm9, %v390_v11, %v392_v12 }
 0x168   : > { %v396_v14 = vsel %vm321_vm6, %v394_v13, 0.0  ;;  %vm814_vm6 = vcmask 367616  }
 0x169   : > { %397 = vst [vmem:[#allocation2 + $0x90] sm:$0xf] %v396_v14  ;;  %v479_v15 = vpop.permute.xlu0 %478 }
 0x16a   : > { %v481_v16 = vpop.permute.xlu1 %480 }
 0x16b   : > { %v483_v17 = vsel %vm482_vm11, %v479_v15, %v481_v16  ;;  %v864_v18 = vld [vmem:[#allocation2 + $0x98] sm:$0xff] }
 0x16c   : > { %v485_v19 = vsel %vm410_vm3, %v483_v17, 0.0  ;;  %941 = vmatpush2.msra.mxu0 %v864_v18  ;;  %vm636_vm3 = vcmask 384000  }
 0x16d   : > { %486 = vst [vmem:[#allocation2 + $0x94] sm:$0xf] %v485_v19  ;;  %v301_v20 = vpop.permute.xlu0 %300  ;;  %942 = vmatprep.subr.mxu0 %v1390_v2 }
 0x16e   : > { %v303_v21 = vpop.permute.xlu1 %302 }
 0x16f   : > { %v305_v22 = vsel %vm304_vm13, %v301_v20, %v303_v21 }
 0x170   : > { %v307_v23 = vsel %vm232_vm4, %v305_v22, 0.0  ;;  %vm725_vm4 = vcmask 375808  }
 0x171   : > { %308 = vst [vmem:[#allocation2 + $0x8c] sm:$0xf] %v307_v23  ;;  %v811_v24 = vpop.permute.xlu0 %810 }
 0x172   : > { %v813_v25 = vpop.permute.xlu1 %812 }
 0x173   : > { %v815_v26 = vsel %vm814_vm6, %v811_v24, %v813_v25 }
 0x174   : > { %v817_v27 = vsel %vm755_vm10, %v815_v26, 0.0  ;;  %v863_v28 = vld [vmem:[#allocation2 + $0x90] sm:$0xff] }
 0x175   : > { %818 = vst [vmem:[#allocation2 + $0x88] sm:$0xf] %v817_v27  ;;  %943 = vmatpush2.msra.mxu0 %v863_v28  ;;  %v633_v29 = vpop.permute.xlu0 %632 }
 0x176   : > { %v635_v30 = vpop.permute.xlu1 %634  ;;  %944 = vmatprep.subr.mxu0 %v1390_v2 }
 0x177   : > { %v637_v31 = vsel %vm636_vm3, %v633_v29, %v635_v30 }
 0x178   : > { %v639_v32 = vsel %vm577_vm12, %v637_v31, 0.0 }
 0x179   : > { %640 = vst [vmem:[#allocation2 + $0x80] sm:$0xf] %v639_v32  ;;  %v722_v33 = vpop.permute.xlu0 %721 }
 0x17a   : > { %v724_v34 = vpop.permute.xlu1 %723 }
 0x17b   : > { %v726_v35 = vsel %vm725_vm4, %v722_v33, %v724_v34 }
 0x17c   : > { %v728_v36 = vsel %vm666_vm8, %v726_v35, 0.0  ;;  %v862_v37 = vld [vmem:[#allocation2 + $0x88] sm:$0xff] }
 0x17d   : > { %729 = vst [vmem:[#allocation2 + $0x84] sm:$0xf] %v728_v36  ;;  %945 = vmatpush2.msra.mxu0 %v862_v37 }
 0x17e   : > { %946 = vmatprep.subr.mxu0 %v1390_v2 }
 0x184   : > { %v861_v38 = vld [vmem:[#allocation2 + $0x80] sm:$0xff] }
 0x185   : > { %947 = vmatpush2.msra.mxu0 %v861_v38 }
 0x186   : > { %949 = vmatmul.mubr.f32.vlgmr.msra.gmra.mxu0 %v843_v0  ;;  %v874_v1 = vpop.permute.xlu0 %873 }
 0x246   : > { %v950_v7 = vpop.f32.mrf.mxu0 }
 0x247   : > { %v951_v39 = vadd.f32 %v950_v7, %v874_v1 }
 0x248   : > { %v952_v2 = vpop.f32.mrf.mxu0 }
 0x249   : > { %954 = vst [vmem:[%s217_s22] sm:$0xff] %v951_v39 }
 0x24a   : > { %1296 = shalt.err (!%p1293_p7)
}
 0x24b   : > { %s1297_s21 = scalar_lea.hbm %s1829_s30, 128  ;;  %s1301_s7 = scalar_lea.hbm %s1879_s3, 512 }
 0x24c   : > { %p1298_p9 = scmp.ne.s32.totalorder %s1829_s30, %s1297_s21  ;;  %p1302_p12 = scmp.lt.s32.totalorder %s1829_s30, %s1879_s3 }
 0x24d   : > { %p1303_p10 = scmp.lt.s32.totalorder %s1301_s7, %s1297_s21 }
 0x24e   : > { %p1299_p6 = pnand %p1298_p9, %p1547_p13 }
 0x24f   : > { %p1304_p0 = por %p1303_p10, %p1302_p12 }
 0x250   : > { %p1300_p11 = pneg %p1299_p6 }
 0x252   : > { %p1305_p1 = pnand %p1304_p0, %p1300_p11 }
 0x254   : > { %1308 = shalt.err (!%p1305_p1)
}
 0x255   : > { %1093 = dma.vmem_to_hbm [thread:$0]  (%p1547_p13), %s972_s20, 128, %s1829_s30, %s956_s4  }
 0x256 PF: > { %s1898_s29 = sld [smem:[#allocation12_spill]]  ;;  %p1110_p4 = scmp.ge.s32.totalorder %s1383_s19, 2 }
 0x257   : > { %s1899_s11 = sld [smem:[#allocation14_spill]] }
 0x25c   : > { %s983_s25 = sand.u32 1, %s1898_s29  }
 0x25d   : > { %p1900_p8 = scmp.ne.s32.totalorder %s1899_s11, 0  ;;  %s984_s26 = scalar_lea.sflag [#allocation5], %s983_s25 }
 0x25f   : > { %p1104_p3 = pnand %p1110_p4, %p1900_p8 }
 0x261   : > { %p1105_p2 = pneg %p1104_p3 }
 0x263   : > { %1350 = dma.done.wait (%p1105_p2), %s984_s26, 128  }
 0x264   : > { %1352 = vsyncadd (%p1105_p2), %s984_s26, 4294967168  ;;  %s20_s19 = sadd.s32 1, %s1383_s19   ;;  %s1901_s15 = sld [smem:[#allocation13_spill]] }
 0x265   : > { %p17_p5 = scmp.ge.s32.totalorder %s20_s19, 6   ;;  %s1902_s17 = sld [smem:[#allocation15_spill]] }
 0x266   : > { %s1903_s12 = smov %s1359_s13  ;;  %s1904_s13 = smov %s1363_s14 }
 0x267   : > { %s1905_s14 = smov %s1564_s5  ;;  %s1906_s16 = smov %s1379_s18 }
 0x268   : > { %s1907_s18 = smov %s1913_s6  ;;  %19 = sbr.rel (!%p17_p5) target bundleno = 10 (0xa), region = 81 }
 0x26d   :  { %989 = vsyncpa [#allocation4], 1 }
 0x26e   :  { %991 = vsyncpa [#allocation4 + $0x1], 1 }
 0x26f   :  { %992 = vsyncpa [#allocation7], 1 }
 0x270   :  { %993 = vsyncpa [#allocation5], 1 }
 0x271   :  { %995 = vsyncpa [#allocation5 + $0x1], 1 }

</bundles_post_ra>
